<compile_context>
chip_gen: v5e
topology: v5e:2x2
jax: 0.10.0
libtpu: 0.0.40
codegen_flags: <defaults>
</compile_context>

<pallas_src>
import functools

import jax
import jax.numpy as jnp
from jax.experimental import pallas as pl
from jax.experimental.pallas import tpu as pltpu


def _gelu_exact(x):
    """Exact (erf-based) GELU matching nn.GELU().

    erf uses the Abramowitz-Stegun 7.1.26 rational approximation
    (|err| < 1.5e-7), built only from ops guaranteed to lower on the VPU/EUP.
    """
    z = x * 0.7071067811865476          # x / sqrt(2)
    az = jnp.abs(z)
    t = 1.0 / (1.0 + 0.3275911 * az)
    poly = t * (0.254829592 + t * (-0.284496736 + t * (1.421413741
               + t * (-1.453152027 + t * 1.061405429))))
    erf_abs = 1.0 - poly * jnp.exp(-az * az)
    erf_z = jnp.where(z >= 0.0, erf_abs, -erf_abs)
    return 0.5 * x * (1.0 + erf_z)


def _mlp_kernel(x_ref, w1_ref, b1_ref, wd_ref, bd_ref, w2_ref, b2_ref, o_ref,
                *, H, W):
    """One batch element; channels on sublanes, flattened H*W on lanes.

    x_ref : (1, Cin, HW)     input (NCHW, spatial flattened)
    w1_ref: (hidden, Cin)    fc1 weight      b1_ref: (hidden, 1)
    wd_ref: (9, hidden, 1)   depthwise taps  bd_ref: (hidden, 1)
    w2_ref: (Cout, hidden)   fc2 weight      b2_ref: (Cout, 1)
    o_ref : (1, Cout, HW)    output (NCHW, spatial flattened)
    """
    HW = H * W
    hidden = w1_ref.shape[0]
    PAD = 128                                     # lane-aligned zero pad

    x = x_ref[0]                                  # (Cin, HW)

    # fc1: 1x1 conv == one MXU matmul, lane-dense (hidden, HW) result.
    h = jnp.dot(w1_ref[...], x, preferred_element_type=jnp.float32)
    h = h + b1_ref[...]

    # Depthwise 3x3 'same' conv on the flattened spatial (lane) axis.
    # Pad a full lane tile of zeros on both sides so every shifted window is a
    # static in-range slice; out-of-image rows read the zero pad.
    zeros = jnp.zeros((hidden, PAD), jnp.float32)
    hp = jnp.concatenate([zeros, h, zeros], axis=1)    # (hidden, PAD+HW+PAD)

    # Column index of each output pixel, to mask the horizontal row wrap.
    col = jax.lax.broadcasted_iota(jnp.int32, (1, HW), 1) % W
    not_left = col > 0                 # valid source when dw == -1
    not_right = col < (W - 1)          # valid source when dw == +1

    acc = jnp.zeros((hidden, HW), jnp.float32)
    for kh in range(3):
        for kw in range(3):
            dh, dw = kh - 1, kw - 1
            d = dh * W + dw
            shifted = hp[:, PAD + d: PAD + d + HW]     # == h[:, j + d]
            if dw == -1:
                shifted = jnp.where(not_left, shifted, 0.0)
            elif dw == 1:
                shifted = jnp.where(not_right, shifted, 0.0)
            acc = acc + shifted * wd_ref[kh * 3 + kw]  # (hidden, 1) tap weight
    acc = acc + bd_ref[...]

    # GELU (exact).  nn.Dropout(p=0.0) is the identity and is folded away.
    # TODO(synk): training-mode Dropout(p>0) would need pltpu.prng_* bits.
    a = _gelu_exact(acc)

    # fc2: 1x1 conv == one MXU matmul; lane-dense (Cout, HW) output store.
    out = jnp.dot(w2_ref[...], a, preferred_element_type=jnp.float32)
    out = out + b2_ref[...]
    o_ref[0] = out.astype(o_ref.dtype)


def mlp_forward(x, w1, b1, wd, bd, w2, b2):
    """AFENet Mlp.forward on NCHW input.

    x : (N, Cin, H, W)
    w1: (hidden, Cin, 1, 1), b1: (hidden,)      -- fc1
    wd: (hidden, 1, 3, 3),   bd: (hidden,)      -- depthwise conv
    w2: (Cout, hidden, 1, 1), b2: (Cout,)       -- fc2
    returns (N, Cout, H, W)
    """
    N, Cin, H, W = x.shape
    hidden = w1.shape[0]
    Cout = w2.shape[0]
    HW = H * W

    # Pure (contiguity-preserving) reshapes: stay in NCHW, spatial on lanes.
    x2 = x.reshape(N, Cin, HW)
    w1m = w1.reshape(hidden, Cin)
    b1m = b1.reshape(hidden, 1)
    wdm = wd.reshape(hidden, 9).T.reshape(9, hidden, 1)   # tap-major taps
    bdm = bd.reshape(hidden, 1)
    w2m = w2.reshape(Cout, hidden)
    b2m = b2.reshape(Cout, 1)

    kernel = functools.partial(_mlp_kernel, H=H, W=W)
    out = pl.pallas_call(
        kernel,
        out_shape=jax.ShapeDtypeStruct((N, Cout, HW), x.dtype),
        grid=(N,),
        in_specs=[
            pl.BlockSpec((1, Cin, HW), lambda n: (n, 0, 0)),
            pl.BlockSpec((hidden, Cin), lambda n: (0, 0)),
            pl.BlockSpec((hidden, 1), lambda n: (0, 0)),
            pl.BlockSpec((9, hidden, 1), lambda n: (0, 0, 0)),
            pl.BlockSpec((hidden, 1), lambda n: (0, 0)),
            pl.BlockSpec((Cout, hidden), lambda n: (0, 0)),
            pl.BlockSpec((Cout, 1), lambda n: (0, 0)),
        ],
        out_specs=pl.BlockSpec((1, Cout, HW), lambda n: (n, 0, 0)),
        compiler_params=pltpu.CompilerParams(
            dimension_semantics=("parallel",)),
    )(x2, w1m, b1m, wdm, bdm, w2m, b2m)
    return out.reshape(N, Cout, H, W)


def mlp_reference(x, w1, b1, wd, bd, w2, b2):
    """Pure-XLA reference with exact GELU (matches the PyTorch module)."""
    dn = ("NCHW", "OIHW", "NCHW")
    prec = jax.lax.Precision.HIGHEST
    y = jax.lax.conv_general_dilated(x, w1, (1, 1), "VALID",
                                     dimension_numbers=dn, precision=prec)
    y = y + b1[None, :, None, None]
    y = jax.lax.conv_general_dilated(y, wd, (1, 1), "SAME",
                                     dimension_numbers=dn,
                                     feature_group_count=wd.shape[0],
                                     precision=prec)
    y = y + bd[None, :, None, None]
    y = jax.nn.gelu(y, approximate=False)
    y = jax.lax.conv_general_dilated(y, w2, (1, 1), "VALID",
                                     dimension_numbers=dn, precision=prec)
    return y + b2[None, :, None, None]


if __name__ == "__main__":
    key = jax.random.PRNGKey(0)
    kx, k1, k2, k3, k4, k5, k6 = jax.random.split(key, 7)

    N, C, H, W = 2, 4, 16, 16          # batch=2, in_features=4, 16x16 spatial
    hidden = 32                        # hidden_features=32, out_features=C

    x = jax.random.normal(kx, (N, C, H, W), dtype=jnp.float32)
    w1 = 0.2 * jax.random.normal(k1, (hidden, C, 1, 1), dtype=jnp.float32)
    b1 = 0.1 * jax.random.normal(k2, (hidden,), dtype=jnp.float32)
    wd = 0.2 * jax.random.normal(k3, (hidden, 1, 3, 3), dtype=jnp.float32)
    bd = 0.1 * jax.random.normal(k4, (hidden,), dtype=jnp.float32)
    w2 = 0.2 * jax.random.normal(k5, (C, hidden, 1, 1), dtype=jnp.float32)
    b2 = 0.1 * jax.random.normal(k6, (C,), dtype=jnp.float32)

    out = mlp_forward(x, w1, b1, wd, bd, w2, b2)
    out = jax.block_until_ready(out)
    assert out.shape == (N, C, H, W), out.shape

    ref = mlp_reference(x, w1, b1, wd, bd, w2, b2)
    err = float(jnp.max(jnp.abs(out - ref)))
    assert jnp.allclose(out, ref, atol=1e-4, rtol=1e-4), err

    print("KERNEL_OK")
</pallas_src>

<mosaic_0001>
module attributes {stable_mosaic.version = 11 : i64} {
  func.func @_mlp_kernel(%arg0: i32, %arg1: memref<1x4x256xf32, #tpu.memory_space<vmem>>, %arg2: memref<32x4xf32, #tpu.memory_space<vmem>>, %arg3: memref<32x1xf32, #tpu.memory_space<vmem>>, %arg4: memref<9x32x1xf32, #tpu.memory_space<vmem>>, %arg5: memref<32x1xf32, #tpu.memory_space<vmem>>, %arg6: memref<4x32xf32, #tpu.memory_space<vmem>>, %arg7: memref<4x1xf32, #tpu.memory_space<vmem>>, %arg8: memref<1x4x256xf32, #tpu.memory_space<vmem>>) attributes {dimension_semantics = [#tpu.dimension_semantics<parallel>], iteration_bounds = array<i64: 2>, scalar_prefetch = 0 : i64, scratch_operands = 0 : i64, tpu.core_type = #tpu.core_type<tc>, window_params = [{transform_indices = @transform_0, window_bounds = array<i64: 1, 4, 256>}, {pipeline_mode = #tpu.pipeline_mode<synchronous>, transform_indices = @transform_1, window_bounds = array<i64: 32, 4>}, {pipeline_mode = #tpu.pipeline_mode<synchronous>, transform_indices = @transform_2, window_bounds = array<i64: 32, 1>}, {pipeline_mode = #tpu.pipeline_mode<synchronous>, transform_indices = @transform_3, window_bounds = array<i64: 9, 32, 1>}, {pipeline_mode = #tpu.pipeline_mode<synchronous>, transform_indices = @transform_4, window_bounds = array<i64: 32, 1>}, {pipeline_mode = #tpu.pipeline_mode<synchronous>, transform_indices = @transform_5, window_bounds = array<i64: 4, 32>}, {pipeline_mode = #tpu.pipeline_mode<synchronous>, transform_indices = @transform_6, window_bounds = array<i64: 4, 1>}, {transform_indices = @transform_7, window_bounds = array<i64: 1, 4, 256>}]} {
    %c0 = arith.constant 0 : index
    %c0_0 = arith.constant 0 : index
    %c0_1 = arith.constant 0 : index
    %0 = vector.load %arg1[%c0, %c0_0, %c0_1] : memref<1x4x256xf32, #tpu.memory_space<vmem>>, vector<1x4x256xf32>
    %1 = vector.shape_cast %0 : vector<1x4x256xf32> to vector<4x256xf32>
    %c0_2 = arith.constant 0 : index
    %c0_3 = arith.constant 0 : index
    %2 = vector.load %arg2[%c0_2, %c0_3] : memref<32x4xf32, #tpu.memory_space<vmem>>, vector<32x4xf32>
    %cst = arith.constant dense<0.000000e+00> : vector<32x256xf32>
    %3 = tpu.matmul %2, %1, %cst {dimension_numbers = #tpu.dot_dimension_numbers<[1], [0], [0], [1], [0, 0, 1, 1], [], []>} : vector<32x4xf32>, vector<4x256xf32>, vector<32x256xf32> -> vector<32x256xf32>
    %c0_4 = arith.constant 0 : index
    %c0_5 = arith.constant 0 : index
    %4 = vector.load %arg3[%c0_4, %c0_5] : memref<32x1xf32, #tpu.memory_space<vmem>>, vector<32x1xf32>
    %5 = vector.broadcast %4 : vector<32x1xf32> to vector<32x256xf32>
    %6 = arith.addf %3, %5 : vector<32x256xf32>
    %cst_6 = arith.constant 0.000000e+00 : f32
    %7 = vector.broadcast %cst_6 : f32 to vector<32x128xf32>
    %8 = tpu.concatenate %7, %6, %7 in 1 : vector<32x128xf32>, vector<32x256xf32>, vector<32x128xf32> -> vector<32x512xf32>
    %9 = tpu.iota {dimensions = array<i32: 1>} : vector<1x256xi32>
    %c16_i32 = arith.constant 16 : i32
    %c0_i32 = arith.constant 0 : i32
    %10 = arith.cmpi eq, %c16_i32, %c0_i32 : i32
    %c1_i32 = arith.constant 1 : i32
    %11 = arith.select %10, %c1_i32, %c16_i32 : i32
    %12 = vector.broadcast %11 : i32 to vector<1x256xi32>
    %13 = arith.remsi %9, %12 : vector<1x256xi32>
    %c0_i32_7 = arith.constant 0 : i32
    %14 = vector.broadcast %c0_i32_7 : i32 to vector<1x256xi32>
    %15 = arith.cmpi ne, %13, %14 : vector<1x256xi32>
    %c0_i32_8 = arith.constant 0 : i32
    %16 = vector.broadcast %c0_i32_8 : i32 to vector<1x256xi32>
    %17 = arith.cmpi slt, %13, %16 : vector<1x256xi32>
    %c0_i32_9 = arith.constant 0 : i32
    %18 = arith.cmpi slt, %11, %c0_i32_9 : i32
    %19 = vector.broadcast %18 : i1 to vector<1x256xi1>
    %20 = vector.broadcast %19 : vector<1x256xi1> to vector<1x256xi1>
    %21 = arith.xori %17, %20 : vector<1x256xi1>
    %22 = arith.andi %21, %15 : vector<1x256xi1>
    %23 = vector.broadcast %11 : i32 to vector<1x256xi32>
    %24 = arith.addi %13, %23 : vector<1x256xi32>
    %25 = arith.select %22, %24, %13 : vector<1x256xi1>, vector<1x256xi32>
    %c0_i32_10 = arith.constant 0 : i32
    %26 = vector.broadcast %c0_i32_10 : i32 to vector<1x256xi32>
    %27 = arith.cmpi sgt, %25, %26 : vector<1x256xi32>
    %c15_i32 = arith.constant 15 : i32
    %28 = vector.broadcast %c15_i32 : i32 to vector<1x256xi32>
    %29 = arith.cmpi slt, %25, %28 : vector<1x256xi32>
    %cst_11 = arith.constant 0.000000e+00 : f32
    %30 = vector.broadcast %cst_11 : f32 to vector<32x256xf32>
    %31 = vector.extract_strided_slice %8 {offsets = [0, 111], sizes = [32, 256], strides = [1, 1]} : vector<32x512xf32> to vector<32x256xf32>
    %cst_12 = arith.constant 0.000000e+00 : f32
    %32 = vector.shape_cast %27 : vector<1x256xi1> to vector<1x256xi1>
    %33 = vector.broadcast %32 : vector<1x256xi1> to vector<32x256xi1>
    %34 = vector.broadcast %cst_12 : f32 to vector<32x256xf32>
    %35 = arith.select %33, %31, %34 : vector<32x256xi1>, vector<32x256xf32>
    %c0_13 = arith.constant 0 : index
    %c0_14 = arith.constant 0 : index
    %c0_15 = arith.constant 0 : index
    %36 = vector.load %arg4[%c0_13, %c0_14, %c0_15] : memref<9x32x1xf32, #tpu.memory_space<vmem>>, vector<1x32x1xf32>
    %37 = vector.shape_cast %36 : vector<1x32x1xf32> to vector<32x1xf32>
    %38 = vector.broadcast %37 : vector<32x1xf32> to vector<32x256xf32>
    %39 = arith.mulf %35, %38 : vector<32x256xf32>
    %40 = arith.addf %30, %39 : vector<32x256xf32>
    %41 = vector.extract_strided_slice %8 {offsets = [0, 112], sizes = [32, 256], strides = [1, 1]} : vector<32x512xf32> to vector<32x256xf32>
    %c1 = arith.constant 1 : index
    %c0_16 = arith.constant 0 : index
    %c0_17 = arith.constant 0 : index
    %42 = vector.load %arg4[%c1, %c0_16, %c0_17] : memref<9x32x1xf32, #tpu.memory_space<vmem>>, vector<1x32x1xf32>
    %43 = vector.shape_cast %42 : vector<1x32x1xf32> to vector<32x1xf32>
    %44 = vector.broadcast %43 : vector<32x1xf32> to vector<32x256xf32>
    %45 = arith.mulf %41, %44 : vector<32x256xf32>
    %46 = arith.addf %40, %45 : vector<32x256xf32>
    %47 = vector.extract_strided_slice %8 {offsets = [0, 113], sizes = [32, 256], strides = [1, 1]} : vector<32x512xf32> to vector<32x256xf32>
    %cst_18 = arith.constant 0.000000e+00 : f32
    %48 = vector.shape_cast %29 : vector<1x256xi1> to vector<1x256xi1>
    %49 = vector.broadcast %48 : vector<1x256xi1> to vector<32x256xi1>
    %50 = vector.broadcast %cst_18 : f32 to vector<32x256xf32>
    %51 = arith.select %49, %47, %50 : vector<32x256xi1>, vector<32x256xf32>
    %c2 = arith.constant 2 : index
    %c0_19 = arith.constant 0 : index
    %c0_20 = arith.constant 0 : index
    %52 = vector.load %arg4[%c2, %c0_19, %c0_20] : memref<9x32x1xf32, #tpu.memory_space<vmem>>, vector<1x32x1xf32>
    %53 = vector.shape_cast %52 : vector<1x32x1xf32> to vector<32x1xf32>
    %54 = vector.broadcast %53 : vector<32x1xf32> to vector<32x256xf32>
    %55 = arith.mulf %51, %54 : vector<32x256xf32>
    %56 = arith.addf %46, %55 : vector<32x256xf32>
    %57 = vector.extract_strided_slice %8 {offsets = [0, 127], sizes = [32, 256], strides = [1, 1]} : vector<32x512xf32> to vector<32x256xf32>
    %cst_21 = arith.constant 0.000000e+00 : f32
    %58 = vector.shape_cast %27 : vector<1x256xi1> to vector<1x256xi1>
    %59 = vector.broadcast %58 : vector<1x256xi1> to vector<32x256xi1>
    %60 = vector.broadcast %cst_21 : f32 to vector<32x256xf32>
    %61 = arith.select %59, %57, %60 : vector<32x256xi1>, vector<32x256xf32>
    %c3 = arith.constant 3 : index
    %c0_22 = arith.constant 0 : index
    %c0_23 = arith.constant 0 : index
    %62 = vector.load %arg4[%c3, %c0_22, %c0_23] : memref<9x32x1xf32, #tpu.memory_space<vmem>>, vector<1x32x1xf32>
    %63 = vector.shape_cast %62 : vector<1x32x1xf32> to vector<32x1xf32>
    %64 = vector.broadcast %63 : vector<32x1xf32> to vector<32x256xf32>
    %65 = arith.mulf %61, %64 : vector<32x256xf32>
    %66 = arith.addf %56, %65 : vector<32x256xf32>
    %67 = vector.extract_strided_slice %8 {offsets = [0, 128], sizes = [32, 256], strides = [1, 1]} : vector<32x512xf32> to vector<32x256xf32>
    %c4 = arith.constant 4 : index
    %c0_24 = arith.constant 0 : index
    %c0_25 = arith.constant 0 : index
    %68 = vector.load %arg4[%c4, %c0_24, %c0_25] : memref<9x32x1xf32, #tpu.memory_space<vmem>>, vector<1x32x1xf32>
    %69 = vector.shape_cast %68 : vector<1x32x1xf32> to vector<32x1xf32>
    %70 = vector.broadcast %69 : vector<32x1xf32> to vector<32x256xf32>
    %71 = arith.mulf %67, %70 : vector<32x256xf32>
    %72 = arith.addf %66, %71 : vector<32x256xf32>
    %73 = vector.extract_strided_slice %8 {offsets = [0, 129], sizes = [32, 256], strides = [1, 1]} : vector<32x512xf32> to vector<32x256xf32>
    %cst_26 = arith.constant 0.000000e+00 : f32
    %74 = vector.shape_cast %29 : vector<1x256xi1> to vector<1x256xi1>
    %75 = vector.broadcast %74 : vector<1x256xi1> to vector<32x256xi1>
    %76 = vector.broadcast %cst_26 : f32 to vector<32x256xf32>
    %77 = arith.select %75, %73, %76 : vector<32x256xi1>, vector<32x256xf32>
    %c5 = arith.constant 5 : index
    %c0_27 = arith.constant 0 : index
    %c0_28 = arith.constant 0 : index
    %78 = vector.load %arg4[%c5, %c0_27, %c0_28] : memref<9x32x1xf32, #tpu.memory_space<vmem>>, vector<1x32x1xf32>
    %79 = vector.shape_cast %78 : vector<1x32x1xf32> to vector<32x1xf32>
    %80 = vector.broadcast %79 : vector<32x1xf32> to vector<32x256xf32>
    %81 = arith.mulf %77, %80 : vector<32x256xf32>
    %82 = arith.addf %72, %81 : vector<32x256xf32>
    %83 = vector.extract_strided_slice %8 {offsets = [0, 143], sizes = [32, 256], strides = [1, 1]} : vector<32x512xf32> to vector<32x256xf32>
    %cst_29 = arith.constant 0.000000e+00 : f32
    %84 = vector.shape_cast %27 : vector<1x256xi1> to vector<1x256xi1>
    %85 = vector.broadcast %84 : vector<1x256xi1> to vector<32x256xi1>
    %86 = vector.broadcast %cst_29 : f32 to vector<32x256xf32>
    %87 = arith.select %85, %83, %86 : vector<32x256xi1>, vector<32x256xf32>
    %c6 = arith.constant 6 : index
    %c0_30 = arith.constant 0 : index
    %c0_31 = arith.constant 0 : index
    %88 = vector.load %arg4[%c6, %c0_30, %c0_31] : memref<9x32x1xf32, #tpu.memory_space<vmem>>, vector<1x32x1xf32>
    %89 = vector.shape_cast %88 : vector<1x32x1xf32> to vector<32x1xf32>
    %90 = vector.broadcast %89 : vector<32x1xf32> to vector<32x256xf32>
    %91 = arith.mulf %87, %90 : vector<32x256xf32>
    %92 = arith.addf %82, %91 : vector<32x256xf32>
    %93 = vector.extract_strided_slice %8 {offsets = [0, 144], sizes = [32, 256], strides = [1, 1]} : vector<32x512xf32> to vector<32x256xf32>
    %c7 = arith.constant 7 : index
    %c0_32 = arith.constant 0 : index
    %c0_33 = arith.constant 0 : index
    %94 = vector.load %arg4[%c7, %c0_32, %c0_33] : memref<9x32x1xf32, #tpu.memory_space<vmem>>, vector<1x32x1xf32>
    %95 = vector.shape_cast %94 : vector<1x32x1xf32> to vector<32x1xf32>
    %96 = vector.broadcast %95 : vector<32x1xf32> to vector<32x256xf32>
    %97 = arith.mulf %93, %96 : vector<32x256xf32>
    %98 = arith.addf %92, %97 : vector<32x256xf32>
    %99 = vector.extract_strided_slice %8 {offsets = [0, 145], sizes = [32, 256], strides = [1, 1]} : vector<32x512xf32> to vector<32x256xf32>
    %cst_34 = arith.constant 0.000000e+00 : f32
    %100 = vector.shape_cast %29 : vector<1x256xi1> to vector<1x256xi1>
    %101 = vector.broadcast %100 : vector<1x256xi1> to vector<32x256xi1>
    %102 = vector.broadcast %cst_34 : f32 to vector<32x256xf32>
    %103 = arith.select %101, %99, %102 : vector<32x256xi1>, vector<32x256xf32>
    %c8 = arith.constant 8 : index
    %c0_35 = arith.constant 0 : index
    %c0_36 = arith.constant 0 : index
    %104 = vector.load %arg4[%c8, %c0_35, %c0_36] : memref<9x32x1xf32, #tpu.memory_space<vmem>>, vector<1x32x1xf32>
    %105 = vector.shape_cast %104 : vector<1x32x1xf32> to vector<32x1xf32>
    %106 = vector.broadcast %105 : vector<32x1xf32> to vector<32x256xf32>
    %107 = arith.mulf %103, %106 : vector<32x256xf32>
    %108 = arith.addf %98, %107 : vector<32x256xf32>
    %c0_37 = arith.constant 0 : index
    %c0_38 = arith.constant 0 : index
    %109 = vector.load %arg5[%c0_37, %c0_38] : memref<32x1xf32, #tpu.memory_space<vmem>>, vector<32x1xf32>
    %110 = vector.broadcast %109 : vector<32x1xf32> to vector<32x256xf32>
    %111 = arith.addf %108, %110 : vector<32x256xf32>
    %cst_39 = arith.constant 0.707106769 : f32
    %112 = vector.broadcast %cst_39 : f32 to vector<32x256xf32>
    %113 = arith.mulf %111, %112 : vector<32x256xf32>
    %114 = math.absf %113 : vector<32x256xf32>
    %cst_40 = arith.constant 0.327591091 : f32
    %115 = vector.broadcast %cst_40 : f32 to vector<32x256xf32>
    %116 = arith.mulf %115, %114 : vector<32x256xf32>
    %cst_41 = arith.constant 1.000000e+00 : f32
    %117 = vector.broadcast %cst_41 : f32 to vector<32x256xf32>
    %118 = arith.addf %117, %116 : vector<32x256xf32>
    %cst_42 = arith.constant 1.000000e+00 : f32
    %119 = vector.broadcast %cst_42 : f32 to vector<32x256xf32>
    %120 = arith.divf %119, %118 : vector<32x256xf32>
    %cst_43 = arith.constant 1.06140542 : f32
    %121 = vector.broadcast %cst_43 : f32 to vector<32x256xf32>
    %122 = arith.mulf %120, %121 : vector<32x256xf32>
    %cst_44 = arith.constant -1.45315206 : f32
    %123 = vector.broadcast %cst_44 : f32 to vector<32x256xf32>
    %124 = arith.addf %123, %122 : vector<32x256xf32>
    %125 = arith.mulf %120, %124 : vector<32x256xf32>
    %cst_45 = arith.constant 1.42141378 : f32
    %126 = vector.broadcast %cst_45 : f32 to vector<32x256xf32>
    %127 = arith.addf %126, %125 : vector<32x256xf32>
    %128 = arith.mulf %120, %127 : vector<32x256xf32>
    %cst_46 = arith.constant -0.284496725 : f32
    %129 = vector.broadcast %cst_46 : f32 to vector<32x256xf32>
    %130 = arith.addf %129, %128 : vector<32x256xf32>
    %131 = arith.mulf %120, %130 : vector<32x256xf32>
    %cst_47 = arith.constant 0.254829586 : f32
    %132 = vector.broadcast %cst_47 : f32 to vector<32x256xf32>
    %133 = arith.addf %132, %131 : vector<32x256xf32>
    %134 = arith.mulf %120, %133 : vector<32x256xf32>
    %cst_48 = arith.constant 0.000000e+00 : f32
    %135 = vector.broadcast %cst_48 : f32 to vector<32x256xf32>
    %136 = arith.subf %135, %114 : vector<32x256xf32>
    %137 = arith.mulf %136, %114 : vector<32x256xf32>
    %138 = math.exp %137 : vector<32x256xf32>
    %139 = arith.mulf %134, %138 : vector<32x256xf32>
    %cst_49 = arith.constant 1.000000e+00 : f32
    %140 = vector.broadcast %cst_49 : f32 to vector<32x256xf32>
    %141 = arith.subf %140, %139 : vector<32x256xf32>
    %cst_50 = arith.constant 0.000000e+00 : f32
    %142 = vector.broadcast %cst_50 : f32 to vector<32x256xf32>
    %143 = arith.cmpf oge, %113, %142 : vector<32x256xf32>
    %cst_51 = arith.constant 0.000000e+00 : f32
    %144 = vector.broadcast %cst_51 : f32 to vector<32x256xf32>
    %145 = arith.subf %144, %141 : vector<32x256xf32>
    %146 = arith.select %143, %141, %145 : vector<32x256xi1>, vector<32x256xf32>
    %cst_52 = arith.constant 5.000000e-01 : f32
    %147 = vector.broadcast %cst_52 : f32 to vector<32x256xf32>
    %148 = arith.mulf %147, %111 : vector<32x256xf32>
    %cst_53 = arith.constant 1.000000e+00 : f32
    %149 = vector.broadcast %cst_53 : f32 to vector<32x256xf32>
    %150 = arith.addf %149, %146 : vector<32x256xf32>
    %151 = arith.mulf %148, %150 : vector<32x256xf32>
    %c0_54 = arith.constant 0 : index
    %c0_55 = arith.constant 0 : index
    %152 = vector.load %arg6[%c0_54, %c0_55] : memref<4x32xf32, #tpu.memory_space<vmem>>, vector<4x32xf32>
    %cst_56 = arith.constant dense<0.000000e+00> : vector<4x256xf32>
    %153 = tpu.matmul %152, %151, %cst_56 {dimension_numbers = #tpu.dot_dimension_numbers<[1], [0], [0], [1], [0, 0, 1, 1], [], []>} : vector<4x32xf32>, vector<32x256xf32>, vector<4x256xf32> -> vector<4x256xf32>
    %c0_57 = arith.constant 0 : index
    %c0_58 = arith.constant 0 : index
    %154 = vector.load %arg7[%c0_57, %c0_58] : memref<4x1xf32, #tpu.memory_space<vmem>>, vector<4x1xf32>
    %155 = vector.broadcast %154 : vector<4x1xf32> to vector<4x256xf32>
    %156 = arith.addf %153, %155 : vector<4x256xf32>
    %c0_59 = arith.constant 0 : index
    %c0_60 = arith.constant 0 : index
    %c0_61 = arith.constant 0 : index
    %157 = vector.load %arg8[%c0_59, %c0_60, %c0_61] : memref<1x4x256xf32, #tpu.memory_space<vmem>>, vector<1x4x256xf32>
    %158 = vector.shape_cast %157 : vector<1x4x256xf32> to vector<4x256xf32>
    %159 = vector.shape_cast %156 : vector<4x256xf32> to vector<1x4x256xf32>
    tpu.vector_store %arg8[%c0_59, %c0_60, %c0_61], %159 {strides = array<i32>} : memref<1x4x256xf32, #tpu.memory_space<vmem>>, vector<1x4x256xf32>,
    return
  }
  func.func @transform_0(%arg0: i32) -> (i32, i32, i32) {
    %c0_i32 = arith.constant 0 : i32
    %c0_i32_0 = arith.constant 0 : i32
    %c0_i32_1 = arith.constant 0 : i32
    return %arg0, %c0_i32, %c0_i32_0 : i32, i32, i32
  }
  func.func @transform_1(%arg0: i32) -> (i32, i32) {
    %c0_i32 = arith.constant 0 : i32
    %c0_i32_0 = arith.constant 0 : i32
    %c0_i32_1 = arith.constant 0 : i32
    return %c0_i32, %c0_i32_0 : i32, i32
  }
  func.func @transform_2(%arg0: i32) -> (i32, i32) {
    %c0_i32 = arith.constant 0 : i32
    %c0_i32_0 = arith.constant 0 : i32
    %c0_i32_1 = arith.constant 0 : i32
    return %c0_i32, %c0_i32_0 : i32, i32
  }
  func.func @transform_3(%arg0: i32) -> (i32, i32, i32) {
    %c0_i32 = arith.constant 0 : i32
    %c0_i32_0 = arith.constant 0 : i32
    %c0_i32_1 = arith.constant 0 : i32
    %c0_i32_2 = arith.constant 0 : i32
    return %c0_i32, %c0_i32_0, %c0_i32_1 : i32, i32, i32
  }
  func.func @transform_4(%arg0: i32) -> (i32, i32) {
    %c0_i32 = arith.constant 0 : i32
    %c0_i32_0 = arith.constant 0 : i32
    %c0_i32_1 = arith.constant 0 : i32
    return %c0_i32, %c0_i32_0 : i32, i32
  }
  func.func @transform_5(%arg0: i32) -> (i32, i32) {
    %c0_i32 = arith.constant 0 : i32
    %c0_i32_0 = arith.constant 0 : i32
    %c0_i32_1 = arith.constant 0 : i32
    return %c0_i32, %c0_i32_0 : i32, i32
  }
  func.func @transform_6(%arg0: i32) -> (i32, i32) {
    %c0_i32 = arith.constant 0 : i32
    %c0_i32_0 = arith.constant 0 : i32
    %c0_i32_1 = arith.constant 0 : i32
    return %c0_i32, %c0_i32_0 : i32, i32
  }
  func.func @transform_7(%arg0: i32) -> (i32, i32, i32) {
    %c0_i32 = arith.constant 0 : i32
    %c0_i32_0 = arith.constant 0 : i32
    %c0_i32_1 = arith.constant 0 : i32
    return %arg0, %c0_i32, %c0_i32_0 : i32, i32, i32
  }
}

</mosaic_0001>

<bundles_post_ra>
// kernel: tpu_custom_call.1
= control target key start
LH: loop header
LB: loop body
LE: loop exit
PB: predicated region body
PF: predicated region fallthrough
CT: control target
= control target key end

     0   :  { %12 = vsyncpa [#allocation3], 0  ;;  %s3016_s0 = inlined_call_operand.vmem [shape: f32[2,4,256], index: 0, kind: input, shape index: {}]   ;;  %s3017_s1 = inlined_call_operand.vmem [shape: f32[32,4], index: 1, kind: input, shape index: {}]   ;;  %s3018_s2 = inlined_call_operand.vmem [shape: f32[32,1], index: 2, kind: input, shape index: {}]   ;;  %s3019_s3 = inlined_call_operand.vmem [shape: f32[9,32,1], index: 3, kind: input, shape index: {}]   ;;  %s3020_s4 = inlined_call_operand.vmem [shape: f32[32,1], index: 4, kind: input, shape index: {}]   ;;  %s3021_s5 = inlined_call_operand.vmem [shape: f32[4,32], index: 5, kind: input, shape index: {}]   ;;  %s3022_s6 = inlined_call_operand.vmem [shape: f32[4,1], index: 6, kind: input, shape index: {}]   ;;  %s3023_s7 = inlined_call_operand.hbm [shape: f32[2,4,256], index: 7, kind: output, shape index: {}]  }
   0x1   :  { %14 = vsyncpa [#allocation3 + $0x1], 0  ;;  %s1917_s24 = smov 0   ;;  %s1919_s25 = smov 0  }
   0x2   :  { %s1921_s26 = smov 0   ;;  %s1923_s27 = smov 0  }
   0x3 LB: > { %s1938_s28 = sadd.s32 4294967295, %s1865_s27   ;;  %s1659_s29 = sadd.s32 4294967294, %s1865_s27   ;;  %s1865_s27 = sphi %s1923_s27, %s3053_s27   ;;  %s1861_s26 = sphi %s1921_s26, %s3052_s26   ;;  %s1857_s25 = sphi %s1919_s25, %s3051_s25   ;;  %s1853_s24 = sphi %s1917_s24, %s3050_s24  }
   0x4   : > { %s1942_s30 = sadd.s32 1, %s1865_s27   ;;  %s179_s8 = sadd.s32 1, %s1861_s26 }
   0x5   : > { %s176_s9 = ssub.s32 %s1865_s27, %s1942_s30  ;;  %p189_p0 = scmp.ne.s32.totalorder %s1861_s26, %s1857_s25 }
   0x6   : > { %p177_p1 = scmp.eq.s32.totalorder %s176_s9, 0  ;;  %p190_p2 = scmp.eq.s32.totalorder %s1938_s28, 1 }
   0x7   : > { %p195_p3 = scmp.ne.s32.totalorder %s1857_s25, %s1853_s24  ;;  %p196_p4 = scmp.eq.s32.totalorder %s1659_s29, 1 }
   0x8   : > { %s1953_s10 = scalar_select %p177_p1, %s1861_s26, %s179_s8  }
   0x9   : > { %p1955_p5 = por %p190_p2, %p189_p0  ;;  %p1959_p6 = por %p196_p4, %p195_p3 }
   0xa   : > { %p1662_p7 = scmp.ge.s32.totalorder %s1865_s27, 1  ;;  %p240_p8 = scmp.lt.s32.totalorder %s1865_s27, 3 }
   0xc   : > { %p241_p9 = pnand %p1662_p7, %p240_p8 }
   0xd   : > { %s1868_s17 = smov (!%p241_p9), 17   ;;  %p272_p10 = scmp.lt.s32.totalorder (!%p241_p9), %s1938_s28, 1 }
   0xe   : > { %244 = sbr.rel (%p241_p9) target bundleno = 741 (0x2e5), region = 48  ;;  %s1870_s13 = smov (!%p241_p9), 15  }
   0xf   : > { %s1871_s8 = smov (!%p241_p9), 1   ;;  %s1872_s14 = smov (!%p241_p9), 16  }
  0x10   : > { %s1873_s16 = smov (!%p241_p9), 127   ;;  %s1874_s20 = smov (!%p241_p9), 113  }
  0x11   : > { %s1875_s21 = smov (!%p241_p9), 111   ;;  %s1876_s22 = smov (!%p241_p9), 112  }
  0x12   : > { %s269_s23 = sand.u32 (!%p241_p9), 1, %s1857_s25  }
  0x13   : > { %v284_v0 = vld [vmem:[%s3018_s2 + $0x10] sm:$0xff]  ;;  %v282_v1 = vld [vmem:[%s3018_s2] sm:$0xff]  ;;  %v1867_v2 = vmov 0.0   ;;  %v1869_v3 = vmov 0   ;;  %s273_s18 = scalar_select %p272_p10, %s1938_s28, 1  ;;  %v474_v4 = vld [vmem:[%s3019_s3 + $0x8] sm:$0xff] }
  0x14   : > { %430 = vrot.lane.b32.xlu2 %v1867_v2, %s1868_s17  ;;  %1769 = vset.pattern.permute.xlu1 %v1869_v3  ;;  %v285_v5 = vld [vmem:[%s3018_s2 + $0x18] sm:$0xff]  ;;  %v283_v7 = vld [vmem:[%s3018_s2 + $0x8] sm:$0xff]  ;;  %vm323_vm0 = vcmask 1043456   ;;  %v278_v8 = vld [vmem:[%s3017_s1] sm:$0xff]  ;;  %vm310_vm1 = vcmask 31744   ;;  %vm633_vm2 = vcmask 121856  }
  0x15   : > { %1768 = vset.pattern.permute.xlu0 %v1869_v3  ;;  %298 = vperm.xlu1 %1769, %v284_v0   ;;  %s1715_s19 = sshll.u32 %s273_s18, 3  ;;  %v281_v9 = vld [vmem:[%s3017_s1 + $0x18] sm:$0xff]  ;;  %v1676_v12 = vld [vmem:[%s3019_s3 + $0x20] sm:$0xff]  ;;  %v475_v14 = vld [vmem:[%s3019_s3 + $0x10] sm:$0xff]  ;;  %vm448_vm3 = vcmask 138240   ;;  %vm717_vm5 = vcmask 7168  }
  0x16   : > { %288 = vperm.xlu0 %1768, %v282_v1   ;;  %1770 = vset.pattern.permute.xlu2 %v1869_v3  ;;  %s276_s29 = scalar_lea.vmem %s3016_s0, %s1715_s19  ;;  %v473_v13 = vld [vmem:[%s3019_s3] sm:$0xff]  ;;  %v279_v15 = vld [vmem:[%s3017_s1 + $0x8] sm:$0xff]  ;;  %v1679_v16 = vld [vmem:[%s3019_s3 + $0x38] sm:$0xff]  ;;  %vm586_vm7 = vcmask 130048   ;;  %vm842_vm10 = vcmask 1039360   ;;  %vm926_vm11 = vcmask 924672  }
  0x17   : > { %v277_v6 = vld [vmem:[%s276_s29] sm:$0xff]  ;;  %v476_v17 = vld [vmem:[%s3019_s3 + $0x18] sm:$0xff]  ;;  %v1677_v18 = vld [vmem:[%s3019_s3 + $0x28] sm:$0xff]  ;;  %vm1065_vm12 = vcmask 916480   ;;  %vm1108_vm13 = vcmask 908288   ;;  %s1663_s29 = sshll.u32 %s269_s23, 3 }
  0x18   : > { %307 = vst [vmem:[#allocation1] ss:$2 sm:$0xff] %v277_v6  ;;  %v280_v19 = vld [vmem:[%s3017_s1 + $0x10] sm:$0xff]  ;;  %v1703_v22 = vld [vmem:[%s3019_s3 + $0xf8] sm:$0xff]  ;;  %v1681_v23 = vld [vmem:[%s3019_s3 + $0x48] sm:$0xff]  ;;  %s271_s15 = scalar_lea.vmem [#allocation2], %s1663_s29 }
  0x19   : > { %v1682_v20 = vld [vmem:[%s3019_s3 + $0x50] sm:$0xff]  ;;  %v1680_v24 = vld [vmem:[%s3019_s3 + $0x40] sm:$0xff]  ;;  %v1683_v26 = vld [vmem:[%s3019_s3 + $0x58] sm:$0xff]  ;;  %s1823_s19 = scalar_lea.hbm %s3023_s7, 16 }
  0x1a   : > { %v1678_v21 = vld [vmem:[%s3019_s3 + $0x30] sm:$0xff]  ;;  %v1700_v25 = vld [vmem:[%s3019_s3 + $0xe0] sm:$0xff]  ;;  %v1687_v27 = vld [vmem:[%s3019_s3 + $0x78] sm:$0xff] }
  0x1b   : > { %v1684_v28 = vld [vmem:[%s3019_s3 + $0x60] sm:$0xff]  ;;  %v1702_v29 = vld [vmem:[%s3019_s3 + $0xf0] sm:$0xff]  ;;  %v1701_v30 = vld [vmem:[%s3019_s3 + $0xe8] sm:$0xff] }
  0x1c   : > { %484 = vperm.xlu2 %1770, %v474_v4   ;;  %v1685_v31 = vld [vmem:[%s3019_s3 + $0x68] sm:$0xff]  ;;  %v1686_v32 = vld [vmem:[%s3019_s3 + $0x70] sm:$0xff] }
  0x1d   : > { %303 = vperm.xlu1 %1769, %v285_v5  }
  0x1e   : > { %293 = vperm.xlu0 %1768, %v283_v7  }
  0x1f   : > { %v308_v10 = vld.sshfl [vmem:[#allocation1] sm:$0xff pattern:$0x75316420]  ;;  %v309_v11 = vld.sshfl [vmem:[#allocation1 + $0x8] sm:$0xff pattern:$0x75316420] }
  0x20   : > { %1666 = vmatpush.msk.msra.mxu0 %vm323_vm0, %v308_v10  ;;  %1717 = vmatpush.msk.msra.mxu2 %vm323_vm0, %v308_v10 }
  0x21   : > { %1671 = vmatpush.msk.msra.mxu1 %vm323_vm0, %v309_v11  ;;  %1718 = vmatpush.msk.msra.mxu3 %vm323_vm0, %v309_v11 }
  0x22   : > { %1667 = vmatmul.msk.f32.vlgmr.msra.gmra.mxu0 %vm310_vm1, %v278_v8  ;;  %1670 = vmatmul.msk.f32.vlgmr.msra.gmra.mxu2 %vm310_vm1, %v281_v9 }
  0x23   : > { %1672 = vmatmul.msk.f32.vlgmr.msra.gmra.mxu1 %vm310_vm1, %v278_v8  ;;  %1675 = vmatmul.msk.f32.vlgmr.msra.gmra.mxu3 %vm310_vm1, %v281_v9 }
  0x24   : > { %520 = vperm.xlu2 %1770, %v1676_v12  }
  0x25   : > { %479 = vperm.xlu1 %1769, %v473_v13  }
  0x26   : > { %489 = vperm.xlu0 %1768, %v475_v14  }
  0x2a   : > { %1668 = vmatmul.msk.f32.gmra.mxu0 %vm310_vm1, %v279_v15 }
  0x2b   : > { %1673 = vmatmul.msk.f32.gmra.mxu1 %vm310_vm1, %v279_v15 }
  0x2c   : > { %535 = vperm.xlu2 %1770, %v1679_v16  }
  0x2d   : > { %494 = vperm.xlu1 %1769, %v476_v17  }
  0x2e   : > { %525 = vperm.xlu0 %1768, %v1677_v18  }
  0x32   : > { %1669 = vmatmul.msk.f32.gmra.mxu0 %vm310_vm1, %v280_v19 }
  0x33   : > { %1674 = vmatmul.msk.f32.gmra.mxu1 %vm310_vm1, %v280_v19  ;;  %v1691_v19 = vld [vmem:[%s3019_s3 + $0x98] sm:$0xff] }
  0x34   : > { %675 = vperm.xlu2 %1770, %v1682_v20  }
  0x35   : > { %530 = vperm.xlu1 %1769, %v1678_v21  }
  0x36   : > { %615 = vrot.lane.b32.xlu0 %v1867_v2, %s1870_s13 }
  0x3c   : > { %1014 = vperm.xlu2 %1770, %v1703_v22  }
  0x3d   : > { %670 = vperm.xlu1 %1769, %v1681_v23   ;;  %v1690_v23 = vld [vmem:[%s3019_s3 + $0x90] sm:$0xff] }
  0x3e   : > { %665 = vperm.xlu0 %1768, %v1680_v24  }
  0x44   : > { %999 = vperm.xlu2 %1770, %v1700_v25  }
  0x45   : > { %699 = vrot.lane.b32.xlu1 %v1867_v2, %s1871_s8 }
  0x46   : > { %680 = vperm.xlu0 %1768, %v1683_v26  }
  0x4c   : > { %764 = vperm.xlu2 %1770, %v1687_v27  }
  0x4d   : > { %749 = vperm.xlu1 %1769, %v1684_v28   ;;  %v1695_v28 = vld [vmem:[%s3019_s3 + $0xb8] sm:$0xff] }
  0x4e   : > { %1009 = vperm.xlu0 %1768, %v1702_v29   ;;  %v386_v29 = vlaneseq }
  0x55   : > { %1004 = vperm.xlu1 %1769, %v1701_v30  }
  0x56   : > { %754 = vperm.xlu0 %1768, %v1685_v31  }
  0x5d   : > { %759 = vperm.xlu1 %1769, %v1686_v32  }
  0x6e   : > { %v2072_v33 = vpop.permute.xlu2 %430 }
  0x76   : > { %v2074_v34 = vpop.permute.xlu2 %484 }
  0x7e   : > { %v521_v35 = vpop.permute.xlu2 %520 }
  0x7f   : > { %v538_v36 = vmul.f32 0.0, %v521_v35 }
  0x81   : > { %562 = vrot.lane.b32.xlu0 %v538_v36, %s1872_s14  ;;  %v1689_v36 = vld [vmem:[%s3019_s3 + $0x88] sm:$0xff] }
  0x86   : > { %v536_v54 = vpop.permute.xlu2 %535 }
  0x87   : > { %v299_v37 = vpop.permute.xlu1 %298  ;;  %v547_v55 = vmul.f32 0.0, %v536_v54 }
  0x88   : > { %v289_v38 = vpop.permute.xlu0 %288 }
  0x8e   : > { %v2140_v1 = vpop.permute.xlu2 %675 }
  0x8f   : > { %v304_v39 = vpop.permute.xlu1 %303 }
  0x90   : > { %v294_v40 = vpop.permute.xlu0 %293 }
  0x96   : > { %v2155_v9 = vpop.permute.xlu2 %1014 }
  0x97   : > { %v2077_v41 = vpop.permute.xlu1 %479 }
  0x98   : > { %v2079_v42 = vpop.permute.xlu0 %489 }
  0x9e   : > { %v2171_v13 = vpop.permute.xlu2 %999 }
  0x9f   : > { %v2081_v43 = vpop.permute.xlu1 %494  ;;  %v345_v45 = vpop.f32.mrf.mxu0 }
  0xa0   : > { %v2083_v44 = vpop.permute.xlu0 %525  ;;  %v2086_v47 = vadd.f32 %v345_v45, %v289_v38  ;;  %v374_v48 = vpop.f32.mrf.mxu1 }
  0xa1   : > { %v541_v46 = vmul.f32 0.0, %v2083_v44  ;;  %v2097_v52 = vadd.f32 %v374_v48, %v289_v38  ;;  %v1694_v48 = vld [vmem:[%s3019_s3 + $0xb0] sm:$0xff] }
  0xa2   : > { %617 = vrot.lane.b32.xlu1 %v2086_v47, %s1870_s13  ;;  %432 = vrot.lane.b32.xlu2 %v2086_v47, %s1868_s17  ;;  %v539_v51 = vmul.f32 %v521_v35, %v2086_v47 }
  0xa3   : > { %568 = vrot.lane.b32.xlu0 %v541_v46, %s1872_s14  ;;  %v540_v59 = vmul.f32 %v521_v35, %v2097_v52  ;;  %v387_v35 = vand.u32 127, %v386_v29 }
  0xa5   : > { %v354_v53 = vpop.f32.mrf.mxu2 }
  0xa6   : > { %v2103_v56 = vadd.f32 %v354_v53, %v304_v39  ;;  %v383_v61 = vpop.f32.mrf.mxu3  ;;  %v2187_v18 = vpop.permute.xlu2 %764 }
  0xa7   : > { %v2093_v49 = vpop.permute.xlu1 %530  ;;  %v348_v57 = vpop.f32.mrf.mxu0  ;;  %v2124_v63 = vadd.f32 %v383_v61, %v304_v39 }
  0xa8   : > { %v544_v50 = vmul.f32 0.0, %v2093_v49  ;;  %v2110_v58 = vadd.f32 %v348_v57, %v294_v40  ;;  %v548_v60 = vmul.f32 %v536_v54, %v2103_v56  ;;  %v377_v62 = vpop.f32.mrf.mxu1  ;;  %v2149_v4 = vpop.permute.xlu0 %615 }
  0xa9   : > { %v2126_v0 = vadd.f32 %v377_v62, %v294_v40  ;;  %v549_v10 = vmul.f32 %v536_v54, %v2124_v63 }
  0xaa   : > { %564 = vrot.lane.b32.xlu1 %v539_v51, %s1872_s14  ;;  %619 = vrot.lane.b32.xlu2 %v2097_v52, %s1870_s13  ;;  %v542_v3 = vmul.f32 %v2083_v44, %v2110_v58 }
  0xab   : > { %574 = vrot.lane.b32.xlu0 %v544_v50, %s1872_s14  ;;  %v543_v17 = vmul.f32 %v2083_v44, %v2126_v0 }
  0xaf   : > { %v351_v5 = vpop.f32.mrf.mxu0  ;;  %v2163_v11 = vpop.permute.xlu1 %670 }
  0xb0   : > { %v380_v6 = vpop.f32.mrf.mxu1  ;;  %v2151_v7 = vadd.f32 %v351_v5, %v299_v37  ;;  %v2165_v12 = vpop.permute.xlu0 %665 }
  0xb1   : > { %v2153_v8 = vadd.f32 %v380_v6, %v299_v37  ;;  %v393_v37 = vand.u32 15, %v387_v35 }
  0xb2   : > { %629 = vrot.lane.b32.xlu1 %v2103_v56, %s1870_s13  ;;  %701 = vrot.lane.b32.xlu2 %v2086_v47, %s1871_s8  ;;  %v545_v16 = vmul.f32 %v2093_v49, %v2151_v7 }
  0xb3   : > { %580 = vrot.lane.b32.xlu0 %v547_v55, %s1872_s14  ;;  %v546_v24 = vmul.f32 %v2093_v49, %v2153_v8  ;;  %vm2235_vm4 = vcmp.gt.s32.totalorder %v393_v37, 0  ;;  %vm2245_vm6 = vcmp.lt.s32.totalorder %v393_v37, 15  ;;  %v1693_v37 = vld [vmem:[%s3019_s3 + $0xa8] sm:$0xff] }
  0xb7   : > { %v2175_v14 = vpop.permute.xlu1 %699 }
  0xb8   : > { %v2177_v15 = vpop.permute.xlu0 %680 }
  0xba   : > { %436 = vrot.lane.b32.xlu1 %v2110_v58, %s1868_s17  ;;  %566 = vrot.lane.b32.xlu2 %v540_v59, %s1872_s14 }
  0xbb   : > { %434 = vrot.lane.b32.xlu0 %v2097_v52, %s1868_s17 }
  0xbf   : > { %v2192_v20 = vpop.permute.xlu1 %749 }
  0xc0   : > { %v2194_v21 = vpop.permute.xlu0 %1009 }
  0xc2   : > { %582 = vrot.lane.b32.xlu1 %v548_v60, %s1872_s14  ;;  %444 = vrot.lane.b32.xlu2 %v2103_v56, %s1868_s17 }
  0xc3   : > { %703 = vrot.lane.b32.xlu0 %v2097_v52, %s1871_s8 }
  0xc7   : > { %v2207_v25 = vpop.permute.xlu1 %1004 }
  0xc8   : > { %v2212_v26 = vpop.permute.xlu0 %754 }
  0xca   : > { %623 = vrot.lane.b32.xlu1 %v2126_v0, %s1870_s13  ;;  %631 = vrot.lane.b32.xlu2 %v2124_v63, %s1870_s13 }
  0xcb   : > { %446 = vrot.lane.b32.xlu0 %v2124_v63, %s1868_s17 }
  0xcf   : > { %v2221_v30 = vpop.permute.xlu1 %759 }
  0xd2   : > { %705 = vrot.lane.b32.xlu1 %v2110_v58, %s1871_s8  ;;  %713 = vrot.lane.b32.xlu2 %v2103_v56, %s1871_s8 }
  0xd3   : > { %715 = vrot.lane.b32.xlu0 %v2124_v63, %s1871_s8 }
  0xda   : > { %570 = vrot.lane.b32.xlu1 %v542_v3, %s1872_s14  ;;  %438 = vrot.lane.b32.xlu2 %v2126_v0, %s1868_s17 }
  0xdb   : > { %621 = vrot.lane.b32.xlu0 %v2110_v58, %s1870_s13 }
  0xe2   : > { %442 = vrot.lane.b32.xlu1 %v2153_v8, %s1868_s17  ;;  %584 = vrot.lane.b32.xlu2 %v549_v10, %s1872_s14  ;;  %v1699_v10 = vld [vmem:[%s3019_s3 + $0xd8] sm:$0xff] }
  0xe3   : > { %440 = vrot.lane.b32.xlu0 %v2151_v7, %s1868_s17 }
  0xea   : > { %711 = vrot.lane.b32.xlu1 %v2153_v8, %s1871_s8  ;;  %707 = vrot.lane.b32.xlu2 %v2126_v0, %s1871_s8 }
  0xeb   : > { %627 = vrot.lane.b32.xlu0 %v2153_v8, %s1870_s13 }
  0xf2   : > { %576 = vrot.lane.b32.xlu1 %v545_v16, %s1872_s14  ;;  %572 = vrot.lane.b32.xlu2 %v543_v17, %s1872_s14  ;;  %v1688_v16 = vld [vmem:[%s3019_s3 + $0x80] sm:$0xff] }
  0xf3   : > { %709 = vrot.lane.b32.xlu0 %v2151_v7, %s1871_s8  ;;  %v563_v31 = vpop.permute.xlu0 %562  ;;  %s1597_s8 = sshll.u32 %s271_s15, 4  ;;  %s1598_s8 = int_to_ptr.vmem [resolvable:$true] %s1597_s8 }
  0xfa   : > { %828 = vrot.lane.b32.xlu1 %v1867_v2, %s1873_s16  ;;  %625 = vrot.lane.b32.xlu2 %v2151_v7, %s1870_s13 }
  0xfb   : > { %805 = vperm.xlu0 %1768, %v1691_v19  }
  0xfc   : > { %v2200_v22 = vpop.permute.xlu2 %432 }
  0xfd   : > { %v449_v46 = vsel %vm448_vm3, %v2072_v33, %v2200_v22 }
  0xfe   : > { %v465_v51 = vsel %vm2235_vm4, %v449_v46, 0.0 }
  0xff   : > { %v497_v55 = vmul.f32 %v2077_v41, %v465_v51 }
 0x102   : > { %836 = vrot.lane.b32.xlu1 %v2153_v8, %s1873_s16  ;;  %578 = vrot.lane.b32.xlu2 %v546_v24, %s1872_s14  ;;  %v388_v24 = vadd.s32 128, %v387_v35 }
 0x103   : > { %800 = vperm.xlu0 %1768, %v1690_v23  }
 0x104   : > { %v620_v27 = vpop.permute.xlu2 %619 }
 0x10a   : > { %912 = vrot.lane.b32.xlu1 %v1867_v2, %s1874_s20  ;;  %840 = vrot.lane.b32.xlu2 %v2124_v63, %s1873_s16 }
 0x10b   : > { %889 = vperm.xlu0 %1768, %v1695_v28  }
 0x10c   : > { %v2223_v32 = vpop.permute.xlu2 %701 }
 0x10d   : > { %v718_v53 = vsel %vm717_vm5, %v2175_v14, %v2223_v32 }
 0x10e   : > { %v734_v60 = vsel %vm2235_vm4, %v718_v53, 0.0 }
 0x10f   : > { %v767_v17 = vmul.f32 %v2192_v20, %v734_v60 }
 0x112   : > { %832 = vrot.lane.b32.xlu1 %v2126_v0, %s1873_s16  ;;  %838 = vrot.lane.b32.xlu2 %v2103_v56, %s1873_s16 }
 0x113   : > { %795 = vperm.xlu0 %1768, %v1689_v36   ;;  %v400_v36 = vand.u32 15, %v388_v24 }
 0x114   : > { %v618_v39 = vpop.permute.xlu1 %617  ;;  %v567_v44 = vpop.permute.xlu2 %566 }
 0x115   : > { %v2232_v38 = vpop.permute.xlu0 %568  ;;  %v635_v40 = vsel %vm633_vm2, %v618_v39, %v620_v27  ;;  %v634_v50 = vsel %vm633_vm2, %v2149_v4, %v618_v39  ;;  %vm2289_vm8 = vcmp.lt.s32.totalorder %v400_v36, 15  ;;  %vm2295_vm9 = vcmp.gt.s32.totalorder %v400_v36, 0 }
 0x116   : > { %v650_v54 = vsel %vm2245_vm6, %v634_v50, 0.0  ;;  %v651_v51 = vsel %vm2289_vm8, %v635_v40, 0.0 }
 0x117   : > { %v683_v5 = vmul.f32 %v2165_v12, %v650_v54  ;;  %v684_v60 = vmul.f32 %v2165_v12, %v651_v51 }
 0x11a   : > { %920 = vrot.lane.b32.xlu1 %v2153_v8, %s1874_s20  ;;  %924 = vrot.lane.b32.xlu2 %v2124_v63, %s1874_s20 }
 0x11b   : > { %884 = vperm.xlu0 %1768, %v1694_v48  }
 0x11c   : > { %v565_v59 = vpop.permute.xlu1 %564  ;;  %v2267_v61 = vpop.permute.xlu2 %444 }
 0x11d   : > { %v2263_v57 = vpop.permute.xlu0 %574  ;;  %v587_v62 = vsel %vm586_vm7, %v563_v31, %v565_v59  ;;  %v588_v3 = vsel %vm586_vm7, %v565_v59, %v567_v44  ;;  %v455_v53 = vsel %vm448_vm3, %v2072_v33, %v2267_v61  ;;  %v1698_v59 = vld [vmem:[%s3019_s3 + $0xd0] sm:$0xff] }
 0x11e   : > { %v603_v6 = vadd.f32 %v587_v62, %v497_v55  ;;  %v471_v40 = vsel %vm2235_vm4, %v455_v53, 0.0  ;;  %v1027_v53 = vmul.f32 %v2155_v9, %v2124_v63 }
 0x11f   : > { %v503_v12 = vmul.f32 %v2081_v43, %v471_v40 }
 0x120   : > { %v691_v19 = vadd.f32 %v683_v5, %v603_v6 }
 0x122   : > { %790 = vperm.xlu1 %1769, %v1688_v16   ;;  %v2279_v23 = vadd.f32 %v767_v17, %v691_v19  ;;  %834 = vrot.lane.b32.xlu2 %v2151_v7, %s1873_s16 }
 0x123   : > { %973 = vperm.xlu0 %1768, %v1699_v10  }
 0x124   : > { %v630_v28 = vpop.permute.xlu1 %629  ;;  %v632_v29 = vpop.permute.xlu2 %631 }
 0x125   : > { %v581_v27 = vpop.permute.xlu0 %580  ;;  %v641_v31 = vsel %vm633_vm2, %v630_v28, %v632_v29 }
 0x12a   : > { %879 = vperm.xlu1 %1769, %v1693_v37   ;;  %922 = vrot.lane.b32.xlu2 %v2103_v56, %s1874_s20 }
 0x12b   : > { %830 = vrot.lane.b32.xlu0 %v2110_v58, %s1873_s16 }
 0x12c   : > { %v437_v46 = vpop.permute.xlu1 %436  ;;  %v714_v50 = vpop.permute.xlu2 %713 }
 0x12d   : > { %v435_v44 = vpop.permute.xlu0 %434  ;;  %v724_v5 = vsel %vm717_vm5, %v2175_v14, %v714_v50 }
 0x12e   : > { %v450_v48 = vsel %vm448_vm3, %v2200_v22, %v435_v44  ;;  %v640_v22 = vsel %vm633_vm2, %v2149_v4, %v630_v28 }
 0x12f   : > { %v466_v54 = vsel %vm2295_vm9, %v450_v48, 0.0 }
 0x130   : > { %v498_v55 = vmul.f32 %v2077_v41, %v466_v54  ;;  %v656_v41 = vsel %vm2245_vm6, %v640_v22, 0.0  ;;  %v657_v22 = vsel %vm2289_vm8, %v641_v31, 0.0 }
 0x131   : > { %v689_v28 = vmul.f32 %v2177_v15, %v656_v41  ;;  %v690_v41 = vmul.f32 %v2177_v15, %v657_v22 }
 0x132   : > { %v604_v62 = vadd.f32 %v588_v3, %v498_v55  ;;  %968 = vperm.xlu1 %1769, %v1698_v59   ;;  %826 = vrot.lane.b32.xlu2 %v2097_v52, %s1873_s16  ;;  %v740_v3 = vsel %vm2235_vm4, %v724_v5, 0.0  ;;  %v1692_v5 = vld [vmem:[%s3019_s3 + $0xa0] sm:$0xff] }
 0x133   : > { %918 = vrot.lane.b32.xlu0 %v2151_v7, %s1874_s20  ;;  %v773_v48 = vmul.f32 %v2187_v18, %v740_v3 }
 0x134   : > { %v692_v6 = vadd.f32 %v684_v60, %v604_v62  ;;  %v583_v16 = vpop.permute.xlu1 %582  ;;  %v439_v19 = vpop.permute.xlu2 %438 }
 0x135   : > { %v704_v10 = vpop.permute.xlu0 %703  ;;  %v593_v24 = vsel %vm586_vm7, %v581_v27, %v583_v16  ;;  %v452_v36 = vsel %vm448_vm3, %v437_v46, %v439_v19  ;;  %v1697_v19 = vld [vmem:[%s3019_s3 + $0xc8] sm:$0xff] }
 0x136   : > { %v719_v17 = vsel %vm717_vm5, %v2223_v32, %v704_v10  ;;  %v609_v37 = vadd.f32 %v593_v24, %v503_v12  ;;  %v468_v24 = vsel %vm2295_vm9, %v452_v36, 0.0 }
 0x137   : > { %v735_v29 = vsel %vm2295_vm9, %v719_v17, 0.0 }
 0x138   : > { %v768_v44 = vmul.f32 %v2192_v20, %v735_v29  ;;  %v697_v51 = vadd.f32 %v689_v28, %v609_v37  ;;  %v500_v29 = vmul.f32 %v2074_v34, %v468_v24 }
 0x13a   : > { %v2339_v32 = vadd.f32 %v768_v44, %v692_v6  ;;  %1061 = vrot.lane.b32.xlu1 %v1027_v53, %s1876_s22  ;;  %v2344_v27 = vadd.f32 %v773_v48, %v697_v51  ;;  %916 = vrot.lane.b32.xlu2 %v2126_v0, %s1874_s20 }
 0x13b   : > { %1106 = vrot.lane.b32.xlu0 %v2124_v63, %s1875_s21 }
 0x13c   : > { %v624_v54 = vpop.permute.xlu1 %623  ;;  %v585_v59 = vpop.permute.xlu2 %584 }
 0x13d   : > { %v447_v20 = vpop.permute.xlu0 %446  ;;  %v594_v40 = vsel %vm586_vm7, %v583_v16, %v585_v59  ;;  %v451_v16 = vsel %vm448_vm3, %v2072_v33, %v437_v46 }
 0x13e   : > { %v456_v55 = vsel %vm448_vm3, %v2267_v61, %v447_v20 }
 0x13f   : > { %v472_v60 = vsel %vm2295_vm9, %v456_v55, 0.0 }
 0x140   : > { %v504_v62 = vmul.f32 %v2081_v43, %v472_v60 }
 0x142   : > { %v610_v6 = vadd.f32 %v594_v40, %v504_v62  ;;  %874 = vperm.xlu1 %1769, %v1692_v5   ;;  %1094 = vrot.lane.b32.xlu2 %v1867_v2, %s1875_s21  ;;  %v1028_v2 = vmul.f32 0.0, %v2155_v9 }
 0x143   : > { %824 = vrot.lane.b32.xlu0 %v2086_v47, %s1873_s16  ;;  %s1716_s16 = sshll.u32 %s1938_s28, 3  ;;  %s1584_s28 = scalar_lea.sflag [#allocation3], %s269_s23 }
 0x144   : > { %v698_v61 = vadd.f32 %v690_v41, %v610_v6  ;;  %v706_v12 = vpop.permute.xlu1 %705  ;;  %v708_v43 = vpop.permute.xlu2 %707  ;;  %s1595_s17 = scalar_lea.hbm %s3023_s7, %s1716_s16 }
 0x145   : > { %v716_v31 = vpop.permute.xlu0 %715  ;;  %v721_v3 = vsel %vm717_vm5, %v706_v12, %v708_v43  ;;  %v720_v46 = vsel %vm717_vm5, %v2175_v14, %v706_v12  ;;  %s1599_s18 = sshll.u32 %s1595_s17, 4  ;;  %s1600_s18 = int_to_ptr.hbm [resolvable:$true] %s1599_s18 }
 0x146   : > { %v725_v10 = vsel %vm717_vm5, %v714_v50, %v716_v31  ;;  %v467_v50 = vsel %vm2235_vm4, %v451_v16, 0.0  ;;  %v736_v37 = vsel %vm2235_vm4, %v720_v46, 0.0  ;;  %v737_v48 = vsel %vm2295_vm9, %v721_v3, 0.0  ;;  %s1817_s13 = sshra.s32 %s1600_s18, 4  ;;  %s1818_s13 = int_to_ptr.hbm [resolvable:$true] %s1817_s13 }
 0x147   : > { %v741_v15 = vsel %vm2295_vm9, %v725_v10, 0.0  ;;  %v770_v41 = vmul.f32 %v2212_v26, %v737_v48  ;;  %v1024_v46 = vmul.f32 %v2194_v21, %v2153_v8  ;;  %p1824_p0 = scmp.lt.s32.totalorder %s1818_s13, %s3023_s7 }
 0x148   : > { %v774_v17 = vmul.f32 %v2187_v18, %v741_v15  ;;  %v499_v18 = vmul.f32 %v2074_v34, %v467_v50  ;;  %v1026_v15 = vmul.f32 %v2155_v9, %v2103_v56  ;;  %v1696_v9 = vld [vmem:[%s3019_s3 + $0xc0] sm:$0xff] }
 0x14a   : > { %v2381_v28 = vadd.f32 %v774_v17, %v698_v61  ;;  %963 = vperm.xlu1 %1769, %v1697_v19   ;;  %1063 = vrot.lane.b32.xlu2 %v1028_v2, %s1876_s22 }
 0x14b   : > { %914 = vrot.lane.b32.xlu0 %v2110_v58, %s1874_s20 }
 0x14c   : > { %v571_v36 = vpop.permute.xlu1 %570  ;;  %v573_v20 = vpop.permute.xlu2 %572 }
 0x14d   : > { %v622_v44 = vpop.permute.xlu0 %621  ;;  %v589_v55 = vsel %vm586_vm7, %v2232_v38, %v571_v36  ;;  %v590_v22 = vsel %vm586_vm7, %v571_v36, %v573_v20  ;;  %v769_v38 = vmul.f32 %v2212_v26, %v736_v37  ;;  %v1025_v26 = vmul.f32 0.0, %v2194_v21 }
 0x14e   : > { %v636_v51 = vsel %vm633_vm2, %v2149_v4, %v622_v44  ;;  %v637_v53 = vsel %vm633_vm2, %v622_v44, %v624_v54  ;;  %v605_v60 = vadd.f32 %v589_v55, %v499_v18  ;;  %v606_v5 = vadd.f32 %v590_v22, %v500_v29  ;;  %v1707_v54 = vld [vmem:[%s3019_s3 + $0x118] sm:$0xff] }
 0x14f   : > { %v652_v34 = vsel %vm2245_vm6, %v636_v51, 0.0  ;;  %v653_v59 = vsel %vm2289_vm8, %v637_v53, 0.0 }
 0x150   : > { %v685_v40 = vmul.f32 %v2163_v11, %v652_v34  ;;  %v686_v62 = vmul.f32 %v2163_v11, %v653_v59 }
 0x152   : > { %v693_v6 = vadd.f32 %v685_v40, %v605_v60  ;;  %v694_v61 = vadd.f32 %v686_v62, %v606_v5  ;;  %1155 = vperm.xlu1 %1769, %v1707_v54   ;;  %910 = vrot.lane.b32.xlu2 %v2097_v52, %s1874_s20  ;;  %v1021_v62 = vmul.f32 %v2207_v25, %v2126_v0 }
 0x153   : > { %1104 = vrot.lane.b32.xlu0 %v2103_v56, %s1875_s21 }
 0x154   : > { %v2413_v31 = vadd.f32 %v769_v38, %v693_v6  ;;  %v2415_v11 = vadd.f32 %v770_v41, %v694_v61  ;;  %v443_v10 = vpop.permute.xlu1 %442  ;;  %v626_v43 = vpop.permute.xlu2 %625 }
 0x155   : > { %v441_v12 = vpop.permute.xlu0 %440  ;;  %v638_v24 = vsel %vm633_vm2, %v2149_v4, %v626_v43 }
 0x156   : > { %v454_v16 = vsel %vm448_vm3, %v441_v12, %v443_v10  ;;  %v453_v50 = vsel %vm448_vm3, %v2072_v33, %v441_v12  ;;  %v654_v29 = vsel %vm2245_vm6, %v638_v24, 0.0  ;;  %v1705_v24 = vld [vmem:[%s3019_s3 + $0x108] sm:$0xff] }
 0x157   : > { %v469_v18 = vsel %vm2235_vm4, %v453_v50, 0.0  ;;  %v470_v37 = vsel %vm2295_vm9, %v454_v16, 0.0  ;;  %v687_v44 = vmul.f32 %v2140_v1, %v654_v29 }
 0x158   : > { %v501_v4 = vmul.f32 %v2079_v42, %v469_v18  ;;  %v502_v36 = vmul.f32 %v2079_v42, %v470_v37 }
 0x15a   : > { %1059 = vrot.lane.b32.xlu1 %v1026_v15, %s1876_s22  ;;  %1102 = vrot.lane.b32.xlu2 %v2153_v8, %s1875_s21 }
 0x15b   : > { %1057 = vrot.lane.b32.xlu0 %v1025_v26, %s1876_s22 }
 0x15c   : > { %v712_v17 = vpop.permute.xlu1 %711  ;;  %v579_v2 = vpop.permute.xlu2 %578 }
 0x15d   : > { %v628_v3 = vpop.permute.xlu0 %627 }
 0x15e   : > { %v639_v19 = vsel %vm633_vm2, %v626_v43, %v628_v3 }
 0x15f   : > { %v655_v33 = vsel %vm2289_vm8, %v639_v19, 0.0 }
 0x160   : > { %v688_v48 = vmul.f32 %v2140_v1, %v655_v33 }
 0x162   : > { %1098 = vrot.lane.b32.xlu1 %v2126_v0, %s1875_s21  ;;  %1055 = vrot.lane.b32.xlu2 %v1024_v46, %s1876_s22  ;;  %v1022_v46 = vmul.f32 0.0, %v2207_v25 }
 0x163   : > { %958 = vperm.xlu0 %1768, %v1696_v9   ;;  %v1177_v9 = vld [vmem:[%s3020_s4 + $0x18] sm:$0xff] }
 0x164   : > { %v577_v53 = vpop.permute.xlu1 %576  ;;  %v841_v34 = vpop.permute.xlu2 %840 }
 0x165   : > { %v710_v51 = vpop.permute.xlu0 %709  ;;  %v591_v59 = vsel %vm586_vm7, %v2263_v57, %v577_v53  ;;  %v592_v22 = vsel %vm586_vm7, %v577_v53, %v579_v2  ;;  %v1019_v53 = vmul.f32 0.0, %v2171_v13 }
 0x166   : > { %v722_v20 = vsel %vm717_vm5, %v2175_v14, %v710_v51  ;;  %v723_v55 = vsel %vm717_vm5, %v710_v51, %v712_v17  ;;  %v607_v1 = vadd.f32 %v591_v59, %v501_v4  ;;  %v608_v40 = vadd.f32 %v592_v22, %v502_v36  ;;  %v1706_v14 = vld [vmem:[%s3019_s3 + $0x110] sm:$0xff] }
 0x167   : > { %v738_v60 = vsel %vm2235_vm4, %v722_v20, 0.0  ;;  %v739_v42 = vsel %vm2295_vm9, %v723_v55, 0.0  ;;  %v1023_v17 = vmul.f32 %v2194_v21, %v2151_v7  ;;  %v1020_v20 = vmul.f32 %v2207_v25, %v2110_v58 }
 0x168   : > { %v771_v5 = vmul.f32 %v2221_v30, %v738_v60  ;;  %v772_v57 = vmul.f32 %v2221_v30, %v739_v42  ;;  %v695_v54 = vadd.f32 %v687_v44, %v607_v1  ;;  %v696_v38 = vadd.f32 %v688_v48, %v608_v40 }
 0x16a   : > { %1049 = vrot.lane.b32.xlu1 %v1021_v62, %s1876_s22  ;;  %v779_v41 = vadd.f32 %v771_v5, %v695_v54  ;;  %v780_v6 = vadd.f32 %v772_v57, %v696_v38  ;;  %908 = vrot.lane.b32.xlu2 %v2086_v47, %s1874_s20  ;;  %v1704_v62 = vld [vmem:[%s3019_s3 + $0x100] sm:$0xff] }
 0x16b   : > { %1150 = vperm.xlu0 %1768, %v1706_v14  }
 0x16c   : > { %v2470_v12 = vpop.permute.xlu1 %828  ;;  %v839_v16 = vpop.permute.xlu2 %838 }
 0x16d   : > { %v806_v61 = vpop.permute.xlu0 %805  ;;  %v850_v30 = vsel %vm842_vm10, %v841_v34, %v2470_v12  ;;  %v849_v26 = vsel %vm842_vm10, %v839_v16, %v841_v34  ;;  %v1174_v16 = vld [vmem:[%s3020_s4] sm:$0xff] }
 0x16e   : > { %v814_v10 = vmul.f32 %v806_v61, %v2103_v56  ;;  %v815_v43 = vmul.f32 %v806_v61, %v2124_v63  ;;  %v866_v18 = vsel %vm2289_vm8, %v850_v30, 0.0 }
 0x170   : > { %v822_v15 = vadd.f32 %v814_v10, %v2344_v27  ;;  %v823_v3 = vadd.f32 %v815_v43, %v2381_v28  ;;  %v1175_v43 = vld [vmem:[%s3020_s4 + $0x8] sm:$0xff] }
 0x172   : > { %1092 = vrot.lane.b32.xlu1 %v2097_v52, %s1875_s21  ;;  %1100 = vrot.lane.b32.xlu2 %v2151_v7, %s1875_s21 }
 0x173   : > { %1053 = vrot.lane.b32.xlu0 %v1023_v17, %s1876_s22 }
 0x174   : > { %v837_v63 = vpop.permute.xlu1 %836  ;;  %v925_v27 = vpop.permute.xlu2 %924 }
 0x175   : > { %v801_v56 = vpop.permute.xlu0 %800  ;;  %v848_v28 = vsel %vm842_vm10, %v837_v63, %v2470_v12 }
 0x176   : > { %v812_v19 = vmul.f32 %v801_v56, %v2151_v7  ;;  %v813_v2 = vmul.f32 %v801_v56, %v2153_v8  ;;  %v865_v8 = vsel %vm2245_vm6, %v849_v26, 0.0 }
 0x178   : > { %v820_v50 = vadd.f32 %v812_v19, %v779_v41  ;;  %v821_v21 = vadd.f32 %v813_v2, %v780_v6 }
 0x17a   : > { %1195 = vperm.xlu1 %1769, %v1177_v9   ;;  %1051 = vrot.lane.b32.xlu2 %v1022_v46, %s1876_s22 }
 0x17b   : > { %1145 = vperm.xlu0 %1768, %v1705_v24   ;;  %v1017_v24 = vmul.f32 %v2171_v13, %v2086_v47 }
 0x17c   : > { %v2502_v29 = vpop.permute.xlu1 %912  ;;  %v835_v4 = vpop.permute.xlu2 %834 }
 0x17d   : > { %v890_v7 = vpop.permute.xlu0 %889  ;;  %v934_v44 = vsel %vm926_vm11, %v925_v27, %v2502_v29  ;;  %v847_v36 = vsel %vm842_vm10, %v835_v4, %v837_v63 }
 0x17e   : > { %v898_v37 = vmul.f32 %v890_v7, %v865_v8  ;;  %v899_v33 = vmul.f32 %v890_v7, %v866_v18 }
 0x180   : > { %v906_v48 = vadd.f32 %v898_v37, %v822_v15  ;;  %v907_v51 = vadd.f32 %v899_v33, %v823_v3 }
 0x182   : > { %1047 = vrot.lane.b32.xlu1 %v1020_v20, %s1876_s22  ;;  %1096 = vrot.lane.b32.xlu2 %v2110_v58, %s1875_s21 }
 0x183   : > { %1045 = vrot.lane.b32.xlu0 %v1019_v53, %s1876_s22 }
 0x184   : > { %v833_v34 = vpop.permute.xlu1 %832  ;;  %v923_v60 = vpop.permute.xlu2 %922 }
 0x185   : > { %v796_v55 = vpop.permute.xlu0 %795  ;;  %v846_v42 = vsel %vm842_vm10, %v833_v34, %v2470_v12  ;;  %v933_v1 = vsel %vm926_vm11, %v923_v60, %v925_v27 }
 0x186   : > { %v810_v59 = vmul.f32 %v796_v55, %v2110_v58  ;;  %v811_v22 = vmul.f32 %v796_v55, %v2126_v0  ;;  %v1176_v58 = vld [vmem:[%s3020_s4 + $0x10] sm:$0xff]  ;;  %v1018_v0 = vmul.f32 %v2171_v13, %v2097_v52  ;;  %v949_v26 = vsel %vm2235_vm4, %v933_v1, 0.0 }
 0x187   : > { %v862_v46 = vsel %vm2289_vm8, %v846_v42, 0.0 }
 0x188   : > { %v818_v25 = vadd.f32 %v810_v59, %v2413_v31  ;;  %v819_v40 = vadd.f32 %v811_v22, %v2415_v11  ;;  %v863_v31 = vsel %vm2245_vm6, %v847_v36, 0.0  ;;  %v864_v11 = vsel %vm2289_vm8, %v848_v28, 0.0 }
 0x18a   : > { %1190 = vperm.xlu1 %1769, %v1176_v58   ;;  %1043 = vrot.lane.b32.xlu2 %v1018_v0, %s1876_s22 }
 0x18b   : > { %1140 = vperm.xlu0 %1768, %v1704_v62  }
 0x18c   : > { %v921_v5 = vpop.permute.xlu1 %920  ;;  %v827_v38 = vpop.permute.xlu2 %826 }
 0x18d   : > { %v885_v14 = vpop.permute.xlu0 %884  ;;  %v932_v41 = vsel %vm926_vm11, %v921_v5, %v2502_v29  ;;  %v844_v6 = vsel %vm842_vm10, %v827_v38, %v2470_v12  ;;  %v950_v12 = vsel %vm2295_vm9, %v934_v44, 0.0 }
 0x18e   : > { %v896_v57 = vmul.f32 %v885_v14, %v863_v31  ;;  %v897_v54 = vmul.f32 %v885_v14, %v864_v11  ;;  %v948_v4 = vsel %vm2295_vm9, %v932_v41, 0.0  ;;  %v860_v62 = vsel %vm2289_vm8, %v844_v6, 0.0 }
 0x190   : > { %v904_v61 = vadd.f32 %v896_v57, %v820_v50  ;;  %v905_v10 = vadd.f32 %v897_v54, %v821_v21 }
 0x192   : > { %1180 = vperm.xlu1 %1769, %v1174_v16   ;;  %1090 = vrot.lane.b32.xlu2 %v2086_v47, %s1875_s21  ;;  %s1819_s21 = scalar_lea.hbm %s1818_s13, 8 }
 0x193   : > { %1185 = vperm.xlu0 %1768, %v1175_v43   ;;  %p1820_p11 = scmp.ne.s32.totalorder %s1818_s13, %s1819_s21  ;;  %p1825_p1 = scmp.lt.s32.totalorder %s1823_s19, %s1819_s21 }
 0x194   : > { %v791_v15 = vpop.permute.xlu1 %790  ;;  %v917_v56 = vpop.permute.xlu2 %916 }
 0x195   : > { %v974_v30 = vpop.permute.xlu0 %973  ;;  %v808_v63 = vmul.f32 %v791_v15, %v2086_v47  ;;  %v809_v19 = vmul.f32 %v791_v15, %v2097_v52  ;;  %v930_v2 = vsel %vm926_vm11, %v917_v56, %v2502_v29  ;;  %v1527_v47 = vld [vmem:[%s3022_s6] sm:$0xf]  ;;  %p1821_p12 = pnand %p1820_p11, %p1955_p5  ;;  %p1826_p2 = por %p1825_p1, %p1824_p0 }
 0x196   : > { %v982_v3 = vmul.f32 %v974_v30, %v949_v26  ;;  %v983_v17 = vmul.f32 %v974_v30, %v950_v12 }
 0x197   : > { %v816_v50 = vadd.f32 %v808_v63, %v2279_v23  ;;  %v817_v21 = vadd.f32 %v809_v19, %v2339_v32  ;;  %p1822_p13 = pneg %p1821_p12 }
 0x198   : > { %v2554_v27 = vadd.f32 %v982_v3, %v906_v48  ;;  %v991_v28 = vadd.f32 %v983_v17, %v907_v51 }
 0x199   : > { %p1827_p3 = pnand %p1826_p2, %p1822_p13 }
 0x19a   : > { %1041 = vrot.lane.b32.xlu2 %v1017_v24, %s1876_s22 }
 0x19c   : > { %v880_v52 = vpop.permute.xlu1 %879  ;;  %v2564_v8 = vpop.permute.xlu2 %1094 }
 0x19d   : > { %v831_v9 = vpop.permute.xlu0 %830  ;;  %v895_v18 = vmul.f32 %v880_v52, %v862_v46 }
 0x19e   : > { %v845_v7 = vsel %vm842_vm10, %v831_v9, %v833_v34 }
 0x19f   : > { %v861_v23 = vsel %vm2245_vm6, %v845_v7, 0.0  ;;  %v903_v32 = vadd.f32 %v895_v18, %v819_v40 }
 0x1a0   : > { %v894_v37 = vmul.f32 %v880_v52, %v861_v23 }
 0x1a2   : > { %v902_v13 = vadd.f32 %v894_v37, %v818_v25  ;;  %1530 = vperm.xlu2 %1770, %v1527_v47  }
 0x1a4   : > { %v969_v44 = vpop.permute.xlu1 %968  ;;  %v1064_v48 = vpop.permute.xlu2 %1063 }
 0x1a5   : > { %v919_v33 = vpop.permute.xlu0 %918  ;;  %v981_v51 = vmul.f32 %v969_v44, %v948_v4 }
 0x1a6   : > { %v931_v36 = vsel %vm926_vm11, %v919_v33, %v921_v5 }
 0x1a7   : > { %v947_v53 = vsel %vm2235_vm4, %v931_v36, 0.0  ;;  %v989_v55 = vadd.f32 %v981_v51, %v905_v10 }
 0x1a8   : > { %v980_v20 = vmul.f32 %v969_v44, %v947_v53 }
 0x1aa   : > { %v2576_v34 = vadd.f32 %v980_v20, %v904_v61 }
 0x1ac   : > { %v1062_v22 = vpop.permute.xlu1 %1061  ;;  %v911_v60 = vpop.permute.xlu2 %910 }
 0x1ad   : > { %v1107_v59 = vpop.permute.xlu0 %1106  ;;  %v1073_v42 = vsel %vm1065_vm12, %v1062_v22, %v1064_v48  ;;  %v928_v1 = vsel %vm926_vm11, %v911_v60, %v2502_v29  ;;  %v946_v29 = vsel %vm2295_vm9, %v930_v2, 0.0 }
 0x1ae   : > { %v1089_v25 = vadd.f32 %v1073_v42, %v991_v28  ;;  %v1116_v26 = vsel %vm1108_vm13, %v1107_v59, %v2564_v8  ;;  %v944_v7 = vsel %vm2295_vm9, %v928_v1, 0.0 }
 0x1af   : > { %v1132_v3 = vsel %vm2289_vm8, %v1116_v26, 0.0 }
 0x1b4   : > { %v875_v58 = vpop.permute.xlu1 %874  ;;  %v2584_v14 = vpop.permute.xlu2 %1102 }
 0x1b5   : > { %v825_v40 = vpop.permute.xlu0 %824  ;;  %v893_v31 = vmul.f32 %v875_v58, %v860_v62 }
 0x1b6   : > { %v843_v0 = vsel %vm842_vm10, %v825_v40, %v827_v38 }
 0x1b7   : > { %v859_v11 = vsel %vm2245_vm6, %v843_v0, 0.0  ;;  %v901_v57 = vadd.f32 %v893_v31, %v817_v21 }
 0x1b8   : > { %v892_v5 = vmul.f32 %v875_v58, %v859_v11 }
 0x1ba   : > { %v900_v54 = vadd.f32 %v892_v5, %v816_v50 }
 0x1bc   : > { %v964_v61 = vpop.permute.xlu1 %963  ;;  %v1056_v6 = vpop.permute.xlu2 %1055 }
 0x1bd   : > { %v915_v41 = vpop.permute.xlu0 %914  ;;  %v979_v43 = vmul.f32 %v964_v61, %v946_v29 }
 0x1be   : > { %v929_v10 = vsel %vm926_vm11, %v915_v41, %v917_v56 }
 0x1bf   : > { %v945_v38 = vsel %vm2235_vm4, %v929_v10, 0.0  ;;  %v987_v30 = vadd.f32 %v979_v43, %v903_v32 }
 0x1c0   : > { %v978_v16 = vmul.f32 %v964_v61, %v945_v38 }
 0x1c2   : > { %v2595_v12 = vadd.f32 %v978_v16, %v902_v13 }
 0x1c4   : > { %v1156_v17 = vpop.permute.xlu1 %1155  ;;  %v909_v63 = vpop.permute.xlu2 %908 }
 0x1c5   : > { %v1105_v15 = vpop.permute.xlu0 %1104  ;;  %v1165_v56 = vmul.f32 %v1156_v17, %v1132_v3  ;;  %v927_v9 = vsel %vm926_vm11, %v909_v63, %v911_v60 }
 0x1c6   : > { %v943_v52 = vsel %vm2235_vm4, %v927_v9, 0.0  ;;  %v1115_v53 = vsel %vm1108_vm13, %v1105_v15, %v1107_v59 }
 0x1c7   : > { %v1173_v19 = vadd.f32 %v1165_v56, %v1089_v25  ;;  %v1131_v60 = vsel %vm2245_vm6, %v1115_v53, 0.0 }
 0x1c8   : > { %v1164_v1 = vmul.f32 %v1156_v17, %v1131_v60 }
 0x1cc   : > { %v1060_v28 = vpop.permute.xlu1 %1059  ;;  %v1101_v50 = vpop.permute.xlu2 %1100 }
 0x1cd   : > { %v1058_v2 = vpop.permute.xlu0 %1057  ;;  %v1072_v21 = vsel %vm1065_vm12, %v1060_v28, %v1062_v22 }
 0x1ce   : > { %v1088_v24 = vadd.f32 %v1072_v21, %v2554_v27  ;;  %v1114_v27 = vsel %vm1108_vm13, %v2584_v14, %v2564_v8  ;;  %v1071_v33 = vsel %vm1065_vm12, %v1056_v6, %v1058_v2 }
 0x1cf   : > { %v1130_v45 = vsel %vm2289_vm8, %v1114_v27, 0.0  ;;  %v1087_v44 = vadd.f32 %v1071_v33, %v989_v55 }
 0x1d0   : > { %v1172_v62 = vadd.f32 %v1164_v1, %v1088_v24 }
 0x1d4   : > { %v1099_v18 = vpop.permute.xlu1 %1098  ;;  %v1052_v32 = vpop.permute.xlu2 %1051 }
 0x1d5   : > { %v959_v46 = vpop.permute.xlu0 %958  ;;  %v1112_v25 = vsel %vm1108_vm13, %v1099_v18, %v2564_v8 }
 0x1d6   : > { %v976_v23 = vmul.f32 %v959_v46, %v943_v52  ;;  %v977_v37 = vmul.f32 %v959_v46, %v944_v7  ;;  %v1128_v55 = vsel %vm2289_vm8, %v1112_v25, 0.0 }
 0x1d8   : > { %v2606_v47 = vadd.f32 %v976_v23, %v900_v54  ;;  %v2608_v13 = vadd.f32 %v977_v37, %v901_v57 }
 0x1dc   : > { %v1050_v35 = vpop.permute.xlu1 %1049  ;;  %v1097_v48 = vpop.permute.xlu2 %1096 }
 0x1dd   : > { %v1151_v4 = vpop.permute.xlu0 %1150  ;;  %v1069_v40 = vsel %vm1065_vm12, %v1050_v35, %v1052_v32  ;;  %v1111_v28 = vsel %vm1108_vm13, %v1097_v48, %v1099_v18 }
 0x1de   : > { %v1163_v36 = vmul.f32 %v1151_v4, %v1130_v45  ;;  %v1085_v31 = vadd.f32 %v1069_v40, %v987_v30  ;;  %v1113_v30 = vsel %vm1108_vm13, %v1101_v50, %v2584_v14  ;;  %v1127_v27 = vsel %vm2245_vm6, %v1111_v28, 0.0 }
 0x1df   : > { %v1129_v63 = vsel %vm2245_vm6, %v1113_v30, 0.0 }
 0x1e0   : > { %v1171_v51 = vadd.f32 %v1163_v36, %v1087_v44 }
 0x1e4   : > { %v1093_v22 = vpop.permute.xlu1 %1092  ;;  %v1044_v42 = vpop.permute.xlu2 %1043 }
 0x1e5   : > { %v1054_v20 = vpop.permute.xlu0 %1053 }
 0x1e6   : > { %v1070_v38 = vsel %vm1065_vm12, %v1054_v20, %v1056_v6  ;;  %v1110_v6 = vsel %vm1108_vm13, %v1093_v22, %v2564_v8 }
 0x1e7   : > { %v1086_v17 = vadd.f32 %v1070_v38, %v2576_v34  ;;  %v1126_v52 = vsel %vm2289_vm8, %v1110_v6, 0.0 }
 0x1ec   : > { %v1196_v0 = vpop.permute.xlu1 %1195  ;;  %v1091_v29 = vpop.permute.xlu2 %1090 }
 0x1ed   : > { %v1146_v58 = vpop.permute.xlu0 %1145  ;;  %v1204_v11 = vadd.f32 %v1196_v0, %v1172_v62  ;;  %v1205_v5 = vadd.f32 %v1196_v0, %v1173_v19  ;;  %v1162_v19 = vmul.f32 %v1151_v4, %v1129_v63  ;;  %v1109_v34 = vsel %vm1108_vm13, %v1091_v29, %v1093_v22 }
 0x1ee   : > { %v1161_v59 = vmul.f32 %v1146_v58, %v1128_v55  ;;  %v1125_v4 = vsel %vm2245_vm6, %v1109_v34, 0.0  ;;  %v1160_v22 = vmul.f32 %v1146_v58, %v1127_v27 }
 0x1ef   : > { %v2624_v57 = vmul.f32 0.70710677, %v1204_v11  ;;  %v2626_v54 = vmul.f32 0.70710677, %v1205_v5  ;;  %v1170_v21 = vadd.f32 %v1162_v19, %v1086_v17  ;;  %v2676_v25 = vmul.f32 0.5, %v1204_v11 }
 0x1f0   : > { %v2628_v41 = vadd.f32 %v1161_v59, %v1085_v31  ;;  %v2680_v59 = vmul.f32 0.5, %v1205_v5 }
 0x1f1   : > { %v1220_v61 = vand.u32 2147483647, %v2624_v57  ;;  %v1221_v10 = vand.u32 2147483647, %v2626_v54 }
 0x1f3   : > { %v1228_v43 = vmul.f32 0.3275911, %v1220_v61  ;;  %v1229_v3 = vmul.f32 0.3275911, %v1221_v10  ;;  %v1436_v56 = vsub.f32 0.0, %v1220_v61  ;;  %v1437_v24 = vsub.f32 0.0, %v1221_v10 }
 0x1f4   : > { %v1048_v26 = vpop.permute.xlu1 %1047  ;;  %v1042_v50 = vpop.permute.xlu2 %1041 }
 0x1f5   : > { %v1046_v16 = vpop.permute.xlu0 %1045  ;;  %v2635_v15 = vadd.f32 1.0, %v1228_v43  ;;  %v2643_v2 = vadd.f32 1.0, %v1229_v3  ;;  %v1444_v9 = vmul.f32 %v1436_v56, %v1220_v61  ;;  %v1068_v23 = vsel %vm1065_vm12, %v1048_v26, %v1050_v35 }
 0x1f6   : > { %v1067_v14 = vsel %vm1065_vm12, %v1044_v42, %v1046_v16  ;;  %v1066_v39 = vsel %vm1065_vm12, %v1042_v50, %v1044_v42  ;;  %v1445_v44 = vmul.f32 %v1437_v24, %v1221_v10  ;;  %v1084_v36 = vadd.f32 %v1068_v23, %v2595_v12 }
 0x1f7   : > { %1771 = vrcp.f32 %v2635_v15  ;;  %v1083_v33 = vadd.f32 %v1067_v14, %v2608_v13  ;;  %v1458_v13 = vmul.f32 1.442695, %v1444_v9  ;;  %v1082_v60 = vadd.f32 %v1066_v39, %v2606_v47 }
 0x1f8   : > { %1773 = vrcp.f32 %v2643_v2  ;;  %v1460_v12 = vmul.f32 1.442695, %v1445_v44  ;;  %v1168_v55 = vadd.f32 %v1160_v22, %v1084_v36  ;;  %vm1333_vm14 = vweird.f32 %v2635_v15 }
 0x1f9   : > { %1775 = vpow2.f32 %v1458_v13  ;;  %v1337_v16 = vand.u32 2147483647, %v2635_v15  ;;  %v1339_v56 = vand.u32 2147483648, %v2635_v15  ;;  %v1352_v28 = vand.u32 2147483647, %v2643_v2 }
 0x1fa   : > { %vm1348_vm1 = vweird.f32 %v2643_v2 }
 0x1fb   : > { %vm2743_vm2 = vcmp.eq.f32.partialorder %v1337_v16, 8.507059e+37  ;;  %vm2770_vm5 = vcmp.eq.f32.partialorder %v1352_v28, 8.507059e+37 }
 0x1fc   : > { %v1191_v7 = vpop.permute.xlu1 %1190 }
 0x1fd   : > { %v1141_v46 = vpop.permute.xlu0 %1140  ;;  %v2651_v37 = vadd.f32 %v1191_v7, %v1170_v21  ;;  %v2653_v32 = vadd.f32 %v1191_v7, %v1171_v51  ;;  %v2655_v18 = vpop.eup %1771 }
 0x1fe   : > { %v1159_v8 = vmul.f32 %v1141_v46, %v1126_v52  ;;  %v1158_v48 = vmul.f32 %v1141_v46, %v1125_v4  ;;  %v1329_v53 = vmul.f32 %v2655_v18, %v2635_v15  ;;  %v2678_v40 = vpop.eup %1773  ;;  %vm1334_vm15 = vweird.f32 %v2655_v18 }
 0x1ff   : > { %v2665_v45 = vmul.f32 0.70710677, %v2651_v37  ;;  %v2668_v35 = vmul.f32 0.70710677, %v2653_v32  ;;  %v1344_v38 = vmul.f32 %v2678_v40, %v2643_v2  ;;  %v2718_v14 = vpop.eup %1775  ;;  %vm2755_vm3 = vmor %vm1333_vm14, %vm1334_vm15  ;;  %vm1349_vm4 = vweird.f32 %v2678_v40 }
 0x200   : > { %v1167_v51 = vadd.f32 %v1159_v8, %v1083_v33  ;;  %v1166_v0 = vadd.f32 %v1158_v48, %v1082_v60  ;;  %v1330_v29 = vsub.f32 1.0, %v1329_v53  ;;  %vm1350_vm6 = vmor %vm1348_vm1, %vm1349_vm4  ;;  %vm1484_vm4 = vcmp.ge.f32.partialorder %v2624_v57, 0.0 }
 0x201   : > { %v1218_v20 = vand.u32 2147483647, %v2665_v45  ;;  %v1219_v49 = vand.u32 2147483647, %v2668_v35  ;;  %v1345_v24 = vsub.f32 1.0, %v1344_v38 }
 0x202   : > { %v1331_v63 = vmul.f32 %v2655_v18, %v1330_v29 }
 0x203   : > { %v1226_v42 = vmul.f32 0.3275911, %v1218_v20  ;;  %v1227_v1 = vmul.f32 0.3275911, %v1219_v49  ;;  %v1434_v5 = vsub.f32 0.0, %v1218_v20  ;;  %v1435_v26 = vsub.f32 0.0, %v1219_v49 }
 0x204   : > { %v1181_v31 = vpop.permute.xlu1 %1180  ;;  %v1332_v33 = vadd.f32 %v2655_v18, %v1331_v63 }
 0x205   : > { %v1186_v62 = vpop.permute.xlu0 %1185  ;;  %v2682_v61 = vadd.f32 1.0, %v1226_v42  ;;  %v2684_v58 = vadd.f32 1.0, %v1227_v1  ;;  %v2691_v10 = vadd.f32 %v1181_v31, %v1166_v0  ;;  %v2693_v43 = vadd.f32 %v1181_v31, %v1167_v51 }
 0x206   : > { %v2686_v47 = vadd.f32 %v1186_v62, %v1168_v55  ;;  %v2689_v11 = vadd.f32 %v1186_v62, %v2628_v41  ;;  %v1442_v50 = vmul.f32 %v1434_v5, %v1218_v20  ;;  %v1443_v9 = vmul.f32 %v1435_v26, %v1219_v49 }
 0x207   : > { %1777 = vrcp.f32 %v2682_v61  ;;  %v2708_v3 = vmul.f32 0.70710677, %v2691_v10  ;;  %v2711_v17 = vmul.f32 0.70710677, %v2693_v43  ;;  %v1354_v20 = vand.u32 2147483648, %v2643_v2 }
 0x208   : > { %1779 = vrcp.f32 %v2684_v58  ;;  %v2702_v41 = vmul.f32 0.70710677, %v2686_v47  ;;  %v2705_v30 = vmul.f32 0.70710677, %v2689_v11  ;;  %v1454_v51 = vmul.f32 1.442695, %v1442_v50 }
 0x209   : > { %1781 = vpow2.f32 %v1460_v12  ;;  %v2721_v21 = vand.u32 2147483647, %v2708_v3  ;;  %v2724_v34 = vand.u32 2147483647, %v2711_v17  ;;  %v1456_v22 = vmul.f32 1.442695, %v1443_v9 }
 0x20a   : > { %v1216_v19 = vand.u32 2147483647, %v2702_v41  ;;  %v1217_v6 = vand.u32 2147483647, %v2705_v30  ;;  %v1340_v42 = vor.u32 1.1754944e-38, %v1339_v56  ;;  %v1346_v1 = vmul.f32 %v2678_v40, %v1345_v24 }
 0x20b   : > { %v1222_v8 = vmul.f32 0.3275911, %v2721_v21  ;;  %v1223_v27 = vmul.f32 0.3275911, %v2724_v34  ;;  %v1336_v55 = vsel %vm2755_vm3, %v2655_v18, %v1332_v33  ;;  %v1355_v38 = vor.u32 1.1754944e-38, %v1354_v20 }
 0x20c   : > { %v1224_v46 = vmul.f32 0.3275911, %v1216_v19  ;;  %v1225_v52 = vmul.f32 0.3275911, %v1217_v6  ;;  %v1432_v23 = vsub.f32 0.0, %v1216_v19  ;;  %v1433_v48 = vsub.f32 0.0, %v1217_v6 }
 0x20d   : > { %v2727_v7 = vpop.eup %1777  ;;  %v2741_v53 = vadd.f32 1.0, %v1222_v8  ;;  %v2763_v62 = vadd.f32 1.0, %v1223_v27  ;;  %v1430_v5 = vsub.f32 0.0, %v2721_v21  ;;  %v2777_v16 = vsel %vm2743_vm2, %v1340_v42, %v1336_v55 }
 0x20e   : > { %v2733_v39 = vpop.eup %1779  ;;  %v1299_v4 = vmul.f32 %v2727_v7, %v2682_v61  ;;  %v2737_v44 = vadd.f32 1.0, %v1224_v46  ;;  %v2739_v36 = vadd.f32 1.0, %v1225_v52  ;;  %v1440_v15 = vmul.f32 %v1432_v23, %v1216_v19 }
 0x20f   : > { %v2748_v49 = vpop.eup %1781  ;;  %v1314_v12 = vmul.f32 %v2733_v39, %v2684_v58  ;;  %v1441_v31 = vmul.f32 %v1433_v48, %v1217_v6  ;;  %v2780_v18 = vmul.f32 0.5, %v2651_v37  ;;  %v1364_v63 = vmul.f32 1.0614054, %v2777_v16 }
 0x210   : > { %1783 = vrcp.f32 %v2737_v44  ;;  %v1300_v0 = vsub.f32 1.0, %v1299_v4  ;;  %v1347_v56 = vadd.f32 %v2678_v40, %v1346_v1  ;;  %v1450_v6 = vmul.f32 1.442695, %v1440_v15 }
 0x211   : > { %1785 = vrcp.f32 %v2739_v36  ;;  %v1315_v26 = vsub.f32 1.0, %v1314_v12  ;;  %v2787_v28 = vmul.f32 1.442695, %v1441_v31  ;;  %vm1304_vm7 = vweird.f32 %v2727_v7 }
 0x212   : > { %1787 = vrcp.f32 %v2741_v53  ;;  %v1301_v50 = vmul.f32 %v2727_v7, %v1300_v0  ;;  %v1372_v9 = vadd.f32 -1.4531521, %v1364_v63  ;;  %v1351_v46 = vsel %vm1350_vm6, %v2678_v40, %v1347_v56 }
 0x213   : > { %1789 = vpow2.f32 %v1454_v51  ;;  %vm1303_vm8 = vweird.f32 %v2682_v61  ;;  %v2805_v23 = vsel %vm2770_vm5, %v1355_v38, %v1351_v46  ;;  %v1307_v27 = vand.u32 2147483647, %v2682_v61 }
 0x214   : > { %1791 = vpow2.f32 %v1456_v22  ;;  %v1302_v8 = vadd.f32 %v2727_v7, %v1301_v50  ;;  %vm1273_vm9 = vweird.f32 %v2737_v44  ;;  %v1380_v48 = vmul.f32 %v1372_v9, %v2777_v16  ;;  %vm2818_vm10 = vmor %vm1303_vm8, %vm1304_vm7 }
 0x215   : > { %1793 = vrcp.f32 %v2763_v62  ;;  %v1365_v51 = vmul.f32 1.0614054, %v2805_v23  ;;  %v1309_v42 = vand.u32 2147483648, %v2682_v61  ;;  %vm1308_vm11 = vcmp.eq.f32.partialorder %v1307_v27, 8.507059e+37 }
 0x216   : > { %v2785_v19 = vpop.eup %1783  ;;  %1795 = vpow2.f32 %v1450_v6  ;;  %v1306_v60 = vsel %vm2818_vm10, %v2727_v7, %v1302_v8  ;;  %v1388_v0 = vadd.f32 1.4214138, %v1380_v48  ;;  %v1316_v38 = vmul.f32 %v2733_v39, %v1315_v26 }
 0x217   : > { %v2793_v37 = vpop.eup %1785  ;;  %v1269_v24 = vmul.f32 %v2785_v19, %v2737_v44  ;;  %v1373_v15 = vadd.f32 -1.4531521, %v1365_v51  ;;  %v1310_v29 = vor.u32 1.1754944e-38, %v1309_v42  ;;  %vm1288_vm12 = vweird.f32 %v2739_v36 }
 0x218   : > { %v2799_v52 = vpop.eup %1787  ;;  %v1284_v2 = vmul.f32 %v2793_v37, %v2739_v36  ;;  %v1396_v61 = vmul.f32 %v1388_v0, %v2777_v16  ;;  %v1317_v50 = vadd.f32 %v2733_v39, %v1316_v38  ;;  %vm1318_vm13 = vweird.f32 %v2684_v58 }
 0x219   : > { %v2809_v33 = vpop.eup %1789  ;;  %v1270_v4 = vsub.f32 1.0, %v1269_v24  ;;  %v1239_v40 = vmul.f32 %v2799_v52, %v2741_v53  ;;  %v1381_v56 = vmul.f32 %v1373_v15, %v2805_v23  ;;  %v2841_v6 = vsel %vm1308_vm11, %v1310_v29, %v1306_v60 }
 0x21a   : > { %v2822_v20 = vpop.eup %1791  ;;  %v1285_v22 = vsub.f32 1.0, %v1284_v2  ;;  %vm1319_vm14 = vweird.f32 %v2733_v39  ;;  %v1404_v24 = vadd.f32 -0.28449672, %v1396_v61  ;;  %v1362_v9 = vmul.f32 1.0614054, %v2841_v6 }
 0x21b   : > { %v2828_v1 = vpop.eup %1793  ;;  %v1271_v12 = vmul.f32 %v2785_v19, %v1270_v4  ;;  %v1240_v55 = vsub.f32 1.0, %v1239_v40  ;;  %v1389_v26 = vadd.f32 1.4214138, %v1381_v56  ;;  %vm2847_vm15 = vmor %vm1318_vm13, %vm1319_vm14  ;;  %v1322_v40 = vand.u32 2147483647, %v2684_v58 }
 0x21c   : > { %v2833_v31 = vmul.f32 %v2828_v1, %v2763_v62  ;;  %v1286_v63 = vmul.f32 %v2793_v37, %v1285_v22  ;;  %v2852_v8 = vpop.eup %1795  ;;  %v1321_v4 = vsel %vm2847_vm15, %v2733_v39, %v1317_v50  ;;  %v1324_v48 = vand.u32 2147483648, %v2684_v58 }
 0x21d   : > { %v1241_v7 = vmul.f32 %v2799_v52, %v1240_v55  ;;  %v1272_v2 = vadd.f32 %v2785_v19, %v1271_v12  ;;  %v1412_v51 = vmul.f32 %v1404_v24, %v2777_v16  ;;  %v1397_v13 = vmul.f32 %v1389_v26, %v2805_v23 }
 0x21e   : > { %v1255_v27 = vsub.f32 1.0, %v2833_v31  ;;  %v1370_v22 = vadd.f32 -1.4531521, %v1362_v9  ;;  %vm1274_vm1 = vweird.f32 %v2785_v19  ;;  %vm1323_vm2 = vcmp.eq.f32.partialorder %v1322_v40, 8.507059e+37 }
 0x21f   : > { %v1325_v60 = vor.u32 1.1754944e-38, %v1324_v48  ;;  %vm2865_vm3 = vmor %vm1273_vm9, %vm1274_vm1  ;;  %v1277_v39 = vand.u32 2147483647, %v2737_v44  ;;  %v1279_v12 = vand.u32 2147483648, %v2737_v44  ;;  %v1420_v58 = vadd.f32 0.2548296, %v1412_v51 }
 0x220   : > { %v1405_v55 = vadd.f32 -0.28449672, %v1397_v13  ;;  %v1378_v0 = vmul.f32 %v1370_v22, %v2841_v6  ;;  %v1276_v15 = vsel %vm2865_vm3, %v2785_v19, %v1272_v2  ;;  %vm1243_vm5 = vweird.f32 %v2741_v53 }
 0x221   : > { %v2877_v31 = vsel %vm1323_vm2, %v1325_v60, %v1321_v4  ;;  %vm1278_vm6 = vcmp.eq.f32.partialorder %v1277_v39, 8.507059e+37  ;;  %v1280_v29 = vor.u32 1.1754944e-38, %v1279_v12  ;;  %v1287_v38 = vadd.f32 %v2793_v37, %v1286_v63 }
 0x222   : > { %v1428_v44 = vmul.f32 %v1420_v58, %v2777_v16  ;;  %v1413_v61 = vmul.f32 %v1405_v55, %v2805_v23  ;;  %v1386_v56 = vadd.f32 1.4214138, %v1378_v0  ;;  %v1363_v50 = vmul.f32 1.0614054, %v2877_v31 }
 0x223   : > { %v2883_v24 = vsel %vm1278_vm6, %v1280_v29, %v1276_v15  ;;  %vm1289_vm7 = vweird.f32 %v2793_v37  ;;  %v1292_v19 = vand.u32 2147483647, %v2739_v36  ;;  %v1294_v26 = vand.u32 2147483648, %v2739_v36 }
 0x224   : > { %v1468_v9 = vmul.f32 %v2718_v14, %v1428_v44  ;;  %v1421_v46 = vadd.f32 0.2548296, %v1413_v61  ;;  %v1394_v63 = vmul.f32 %v1386_v56, %v2841_v6  ;;  %v1371_v2 = vadd.f32 -1.4531521, %v1363_v50  ;;  %vm1290_vm8 = vmor %vm1288_vm12, %vm1289_vm7 }
 0x225   : > { %vm1485_vm9 = vcmp.ge.f32.partialorder %v2626_v54, 0.0  ;;  %v1360_v16 = vmul.f32 1.0614054, %v2883_v24  ;;  %v1291_v4 = vsel %vm1290_vm8, %v2793_v37, %v1287_v38  ;;  %vm1293_vm10 = vcmp.eq.f32.partialorder %v1292_v19, 8.507059e+37 }
 0x226   : > { %v1295_v40 = vor.u32 1.1754944e-38, %v1294_v26  ;;  %v1476_v48 = vsub.f32 1.0, %v1468_v9  ;;  %v1429_v51 = vmul.f32 %v1421_v46, %v2805_v23  ;;  %v1402_v13 = vadd.f32 -0.28449672, %v1394_v63 }
 0x227   : > { %v1379_v14 = vmul.f32 %v1371_v2, %v2877_v31  ;;  %v1368_v22 = vadd.f32 -1.4531521, %v1360_v16  ;;  %v1242_v36 = vadd.f32 %v2799_v52, %v1241_v7  ;;  %vm1244_vm11 = vweird.f32 %v2799_v52 }
 0x228   : > { %v2897_v60 = vsel %vm1293_vm10, %v1295_v40, %v1291_v4  ;;  %v1492_v42 = vsub.f32 0.0, %v1476_v48  ;;  %v1469_v39 = vmul.f32 %v2748_v49, %v1429_v51  ;;  %v1410_v37 = vmul.f32 %v1402_v13, %v2841_v6  ;;  %vm2913_vm13 = vmor %vm1243_vm5, %vm1244_vm11 }
 0x229   : > { %v1387_v12 = vadd.f32 1.4214138, %v1379_v14  ;;  %v1256_v58 = vmul.f32 %v2828_v1, %v1255_v27  ;;  %v1376_v23 = vmul.f32 %v1368_v22, %v2883_v24  ;;  %v1361_v55 = vmul.f32 1.0614054, %v2897_v60 }
 0x22a   : > { %v1247_v0 = vand.u32 2147483647, %v2741_v53  ;;  %vm1258_vm12 = vweird.f32 %v2763_v62  ;;  %v1500_v7 = vsel %vm1484_vm4, %v1476_v48, %v1492_v42  ;;  %v1477_v15 = vsub.f32 1.0, %v1469_v39 }
 0x22b   : > { %v1418_v29 = vadd.f32 0.2548296, %v1410_v37  ;;  %v1395_v49 = vmul.f32 %v1387_v12, %v2877_v31  ;;  %vm1482_vm14 = vcmp.ge.f32.partialorder %v2665_v45, 0.0  ;;  %v1516_v27 = vadd.f32 1.0, %v1500_v7 }
 0x22c   : > { %v1384_v44 = vadd.f32 1.4214138, %v1376_v23  ;;  %v1369_v61 = vadd.f32 -1.4531521, %v1361_v55  ;;  %v1246_v57 = vsel %vm2913_vm13, %v2799_v52, %v1242_v36  ;;  %v1493_v56 = vsub.f32 0.0, %v1477_v15 }
 0x22d   : > { %v1426_v50 = vmul.f32 %v1418_v29, %v2841_v6  ;;  %v1403_v19 = vadd.f32 -0.28449672, %v1395_v49  ;;  %v1249_v26 = vand.u32 2147483648, %v2741_v53  ;;  %v1524_v9 = vmul.f32 %v1516_v27, %v2676_v25 }
 0x22e   : > { %v1392_v46 = vmul.f32 %v1384_v44, %v2883_v24  ;;  %v1377_v63 = vmul.f32 %v1369_v61, %v2897_v60  ;;  %vm1248_vm15 = vcmp.eq.f32.partialorder %v1247_v0, 8.507059e+37  ;;  %v1501_v2 = vsel %vm1485_vm9, %v1477_v15, %v1493_v56 }
 0x22f   : > { %v1466_v16 = vmul.f32 %v2809_v33, %v1426_v50  ;;  %v1411_v52 = vmul.f32 %v1403_v19, %v2877_v31  ;;  %v1250_v4 = vor.u32 1.1754944e-38, %v1249_v26  ;;  %1549 = vmatpush.msrb.mxu2 %v1524_v9  ;;  %v1517_v6 = vadd.f32 1.0, %v1501_v2 }
 0x230   : > { %v1400_v40 = vadd.f32 -0.28449672, %v1392_v46  ;;  %v1385_v48 = vadd.f32 1.4214138, %v1377_v63  ;;  %v1257_v53 = vadd.f32 %v2828_v1, %v1256_v58  ;;  %vm1259_vm1 = vweird.f32 %v2828_v1 }
 0x231   : > { %v1474_v25 = vsub.f32 1.0, %v1466_v16  ;;  %v1419_v51 = vadd.f32 0.2548296, %v1411_v52  ;;  %v2931_v13 = vsel %vm1248_vm15, %v1250_v4, %v1246_v57  ;;  %v1525_v54 = vmul.f32 %v1517_v6, %v2680_v59  ;;  %vm2946_vm2 = vmor %vm1258_vm12, %vm1259_vm1 }
 0x232   : > { %v1408_v14 = vmul.f32 %v1400_v40, %v2883_v24  ;;  %v1393_v33 = vmul.f32 %v1385_v48, %v2897_v60  ;;  %v1358_v22 = vmul.f32 1.0614054, %v2931_v13  ;;  %v1438_v36 = vmul.f32 %v1430_v5, %v2721_v21 }
 0x233   : > { %v1490_v42 = vsub.f32 0.0, %v1474_v25  ;;  %v1427_v39 = vmul.f32 %v1419_v51, %v2877_v31  ;;  %v1262_v37 = vand.u32 2147483647, %v2763_v62  ;;  %1797 = vpow2.f32 %v2787_v28  ;;  %1569 = vmatpush.msrb.mxu3 %v1525_v54 }
 0x234   : > { %v1416_v12 = vadd.f32 0.2548296, %v1408_v14  ;;  %v1401_v59 = vadd.f32 -0.28449672, %v1393_v33  ;;  %v1366_v58 = vadd.f32 -1.4531521, %v1358_v22  ;;  %v1261_v31 = vsel %vm2946_vm2, %v2828_v1, %v1257_v53 }
 0x235   : > { %v1498_v21 = vsel %vm1482_vm14, %v1474_v25, %v1490_v42  ;;  %v1467_v5 = vmul.f32 %v2822_v20, %v1427_v39  ;;  %v1264_v28 = vand.u32 2147483648, %v2763_v62  ;;  %vm1483_vm3 = vcmp.ge.f32.partialorder %v2668_v35, 0.0 }
 0x236   : > { %v1514_v55 = vadd.f32 1.0, %v1498_v21  ;;  %v1424_v0 = vmul.f32 %v1416_v12, %v2883_v24  ;;  %v1409_v7 = vmul.f32 %v1401_v59, %v2897_v60  ;;  %v1374_v15 = vmul.f32 %v1366_v58, %v2931_v13 }
 0x237   : > { %v1475_v29 = vsub.f32 1.0, %v1467_v5  ;;  %vm1263_vm4 = vcmp.eq.f32.partialorder %v1262_v37, 8.507059e+37  ;;  %v1265_v45 = vor.u32 1.1754944e-38, %v1264_v28  ;;  %v1431_v62 = vsub.f32 0.0, %v2724_v34  ;;  %v1526_v28 = vld [vmem:[%s3021_s5] sm:$0xf] }
 0x238   : > { %v1522_v20 = vmul.f32 %v1514_v55, %v2780_v18  ;;  %v1464_v49 = vmul.f32 %v2852_v8, %v1424_v0  ;;  %v1417_v38 = vadd.f32 0.2548296, %v1409_v7  ;;  %v1382_v1 = vadd.f32 1.4214138, %v1374_v15 }
 0x239   : > { %v1446_v27 = vmul.f32 1.442695, %v1438_v36  ;;  %v1491_v44 = vsub.f32 0.0, %v1475_v29  ;;  %v1266_v24 = vsel %vm1263_vm4, %v1265_v45, %v1261_v31  ;;  %v1798_v61 = vpop.eup %1797  ;;  %v1507_v8 = vmul.f32 0.5, %v2653_v32 }
 0x23a   : > { %1550 = vmatpush.msrb.mxu2 %v1522_v20  ;;  %v1472_v57 = vsub.f32 1.0, %v1464_v49  ;;  %v1425_v56 = vmul.f32 %v1417_v38, %v2897_v60  ;;  %v1390_v50 = vmul.f32 %v1382_v1, %v2931_v13  ;;  %v1359_v19 = vmul.f32 1.0614054, %v1266_v24 }
 0x23b   : > { %v1499_v18 = vsel %vm1483_vm3, %v1475_v29, %v1491_v44  ;;  %vm1480_vm5 = vcmp.ge.f32.partialorder %v2702_v41, 0.0  ;;  %v1439_v2 = vmul.f32 %v1431_v62, %v2724_v34  ;;  %1799 = vpow2.f32 %v1446_v27  ;;  %v1531_v29 = vpop.permute.xlu2 %1530 }
 0x23c   : > { %v1515_v26 = vadd.f32 1.0, %v1499_v18  ;;  %v1488_v9 = vsub.f32 0.0, %v1472_v57  ;;  %v1465_v46 = vmul.f32 %v1798_v61, %v1425_v56  ;;  %v1398_v63 = vadd.f32 -0.28449672, %v1390_v50 }
 0x23d   : > { %v1367_v16 = vadd.f32 -1.4531521, %v1359_v19  ;;  %v1504_v35 = vmul.f32 0.5, %v2686_v47  ;;  %vm1481_vm6 = vcmp.ge.f32.partialorder %v2705_v30, 0.0  ;;  %v1448_v51 = vmul.f32 1.442695, %v1439_v2 }
 0x23e   : > { %v1523_v52 = vmul.f32 %v1515_v26, %v1507_v8  ;;  %v1496_v60 = vsel %vm1480_vm5, %v1472_v57, %v1488_v9  ;;  %v1473_v4 = vsub.f32 1.0, %v1465_v46  ;;  %v1406_v6 = vmul.f32 %v1398_v63, %v2931_v13 }
 0x23f   : > { %v1512_v40 = vadd.f32 1.0, %v1496_v60  ;;  %v1375_v48 = vmul.f32 %v1367_v16, %v1266_v24  ;;  %v1505_v33 = vmul.f32 0.5, %v2689_v11  ;;  %1801 = vpow2.f32 %v1448_v51 }
 0x240   : > { %1570 = vmatpush.msrb.mxu3 %v1523_v52  ;;  %v1489_v32 = vsub.f32 0.0, %v1473_v4  ;;  %v1414_v53 = vadd.f32 0.2548296, %v1406_v6  ;;  %vm1478_vm7 = vcmp.ge.f32.partialorder %v2708_v3, 0.0  ;;  %vm1533_vm8 = vcmask 261120  }
 0x241   : > { %v1520_v25 = vmul.f32 %v1512_v40, %v1504_v35  ;;  %v1383_v41 = vadd.f32 1.4214138, %v1375_v48  ;;  %v1800_v14 = vpop.eup %1799  ;;  %vm1479_vm9 = vcmp.ge.f32.partialorder %v2711_v17, 0.0 }
 0x242   : > { %v1497_v34 = vsel %vm1481_vm6, %v1473_v4, %v1489_v32  ;;  %v1422_v54 = vmul.f32 %v1414_v53, %v2931_v13  ;;  %v1502_v13 = vmul.f32 0.5, %v2691_v10  ;;  %v1503_v10 = vmul.f32 0.5, %v2693_v43 }
 0x243   : > { %1551 = vmatpush.msrb.mxu2 %v1520_v25  ;;  %v1513_v22 = vadd.f32 1.0, %v1497_v34  ;;  %v1391_v36 = vmul.f32 %v1383_v41, %v1266_v24 }
 0x244   : > { %v1462_v47 = vmul.f32 %v1800_v14, %v1422_v54 }
 0x245   : > { %v1521_v42 = vmul.f32 %v1513_v22, %v1505_v33  ;;  %v1399_v39 = vadd.f32 -0.28449672, %v1391_v36  ;;  %v1802_v11 = vpop.eup %1801 }
 0x246   : > { %v1470_v37 = vsub.f32 1.0, %v1462_v47 }
 0x247   : > { %1571 = vmatpush.msrb.mxu3 %v1521_v42  ;;  %v1407_v12 = vmul.f32 %v1399_v39, %v1266_v24 }
 0x248   : > { %v1486_v30 = vsub.f32 0.0, %v1470_v37 }
 0x249   : > { %v1415_v59 = vadd.f32 0.2548296, %v1407_v12 }
 0x24a   : > { %v1494_v58 = vsel %vm1478_vm7, %v1470_v37, %v1486_v30 }
 0x24b   : > { %v1510_v23 = vadd.f32 1.0, %v1494_v58  ;;  %v1423_v21 = vmul.f32 %v1415_v59, %v1266_v24 }
 0x24d   : > { %v1518_v5 = vmul.f32 %v1510_v23, %v1502_v13  ;;  %v1463_v31 = vmul.f32 %v1802_v11, %v1423_v21 }
 0x24f   : > { %1552 = vmatpush.msrb.mxu2 %v1518_v5  ;;  %v1471_v55 = vsub.f32 1.0, %v1463_v31 }
 0x250   : > { %1708 = vmatmul.msk.f32.vlgmr.msrb.gmra.mxu2 %vm1533_vm8, %v1526_v28 }
 0x251   : > { %v1487_v3 = vsub.f32 0.0, %v1471_v55 }
 0x253   : > { %v1495_v0 = vsel %vm1479_vm9, %v1471_v55, %v1487_v3 }
 0x254   : > { %v1511_v7 = vadd.f32 1.0, %v1495_v0 }
 0x256   : > { %v1519_v15 = vmul.f32 %v1511_v7, %v1503_v10 }
 0x258   : > { %1572 = vmatpush.msrb.mxu3 %v1519_v15 }
 0x259   : > { %1709 = vmatmul.msk.f32.vlgmr.msrb.gmra.mxu3 %vm1533_vm8, %v1526_v28 }
 0x2d3   : > { %v1554_v45 = vpop.f32.mrf.mxu2 }
 0x2d4   : > { %v1555_v43 = vadd.f32 %v1554_v45, %v1531_v29 }
 0x2dc   : > { %v1574_v20 = vpop.f32.mrf.mxu3 }
 0x2dd   : > { %v1575_v49 = vadd.f32 %v1574_v20, %v1531_v29 }
 0x2df   : > { %v1579_v17 = vrot.slane %v1575_v49, 4 }
 0x2e1   : > { %v1580_v38 = vsel %vm323_vm0, %v1555_v43, %v1579_v17 }
 0x2e2   : > { %1582 = vst [vmem:[%s271_s15] sm:$0xff] %v1580_v38 }
 0x2e3   : > { %1830 = shalt.err (!%p1827_p3)
}
 0x2e4   : > { %1719 = dma.vmem_to_hbm [thread:$0]  (%p1955_p5), %s1598_s8, 128, %s1600_s18, %s1584_s28  }
 0x2e5 PF: > { %p1725_p4 = scmp.ge.s32.totalorder %s1865_s27, 2  ;;  %s1611_s23 = sand.u32 1, %s1853_s24  }
 0x2e6   : > { %s1612_s9 = scalar_lea.sflag [#allocation3], %s1611_s23 }
 0x2e7   : > { %p1722_p7 = pnand %p1725_p4, %p1959_p6 }
 0x2e9   : > { %p1723_p8 = pneg %p1722_p7 }
 0x2eb   : > { %1848 = dma.done.wait (%p1723_p8), %s1612_s9, 128  }
 0x2ec   : > { %1850 = vsyncadd (%p1723_p8), %s1612_s9, 4294967168  ;;  %p17_p9 = scmp.ge.s32.totalorder %s1942_s30, 4   ;;  %s3050_s24 = smov %s1857_s25 }
 0x2ed   : > { %s3051_s25 = smov %s1861_s26  ;;  %s3052_s26 = smov %s1953_s10 }
 0x2ee   : > { %s3053_s27 = smov %s1942_s30  ;;  %19 = sbr.rel (!%p17_p9) target bundleno = 3 (0x3), region = 91 }
 0x2f3   :  { %1618 = vsyncpa [#allocation3], 1 }
 0x2f4   :  { %1620 = vsyncpa [#allocation3 + $0x1], 1 }

</bundles_post_ra>
